<compile_context>
chip_gen: v7x
topology: tpu7x:2x2x1
jax: 0.10.0
libtpu: 0.0.40
codegen_flags: <defaults>
</compile_context>

<pallas_src>
import math

import jax
import jax.numpy as jnp
from jax import lax
from jax.experimental import pallas as pl
from jax.experimental.pallas import tpu as pltpu

EMB = 128          # emb_size
HEAD = 8           # head_size
N_HEAD = EMB // HEAD
SEQ_MAX = 64       # sequence_len (causal-mask buffer upper bound)


def _mha_kernel(x_ref, wqkv_ref, wproj_ref, bproj_ref, o_ref):
    """Fused multi-head causal attention + output projection for one batch element."""
    T = x_ref.shape[1]
    x = x_ref[0]                                                        # (T, C)

    # Fused QKV projection: single 128-wide (K=128, N=384) MXU matmul.
    # TODO(synk): on v6e/v7x, casting x / weights to bf16 (f32 accumulate) would ~2x
    #             MXU throughput; kept f32 here (overhead-bound shape, exact f32 parity).
    qkv = jnp.dot(x, wqkv_ref[...], preferred_element_type=jnp.float32)  # (T, 3C)
    q = qkv[:, 0 * EMB:1 * EMB]
    k = qkv[:, 1 * EMB:2 * EMB]
    v = qkv[:, 2 * EMB:3 * EMB]

    # Split heads: (T, C) -> (N_HEAD, T, HEAD)
    qh = jnp.transpose(q.reshape(T, N_HEAD, HEAD), (1, 0, 2))
    kh = jnp.transpose(k.reshape(T, N_HEAD, HEAD), (1, 0, 2))
    vh = jnp.transpose(v.reshape(T, N_HEAD, HEAD), (1, 0, 2))

    # Head-batched scores; contracts the last dims directly (no explicit k.T).
    scores = jnp.einsum('htd,hsd->hts', qh, kh,
                        preferred_element_type=jnp.float32)             # (H, T, T)

    # Causal (tril) mask. Large finite negative instead of -inf so padded / fully
    # masked rows could never NaN out of the softmax.
    row = lax.broadcasted_iota(jnp.int32, (N_HEAD, T, T), 1)
    col = lax.broadcasted_iota(jnp.int32, (N_HEAD, T, T), 2)
    scores = jnp.where(col <= row, scores, -1e30)

    # Softmax with the divide pushed to the EUP (approximate reciprocal).
    m = jnp.max(scores, axis=-1, keepdims=True)
    e = jnp.exp(scores - m)
    denom = jnp.sum(e, axis=-1, keepdims=True)
    weights = e * pl.reciprocal(denom, approx=True)
    # TODO(synk): nn.Dropout(0.4) has no deterministic forward semantics; implemented
    #             eval-mode (identity), matching model.eval() inference.

    out = jnp.einsum('hts,hsd->htd', weights, vh,
                     preferred_element_type=jnp.float32)                # (H, T, HEAD)

    # Concat heads back to a lane-dense (T, C) tile, then fused output projection.
    y = jnp.transpose(out, (1, 0, 2)).reshape(T, EMB)                   # (T, C)
    proj = jnp.dot(y, wproj_ref[...], preferred_element_type=jnp.float32) + bproj_ref[...]
    # TODO(synk): final nn.Dropout(0.4) also omitted (eval-mode identity).
    o_ref[0] = proj.astype(o_ref.dtype)


def masked_multihead_attention(x, wq, wk, wv, w_proj_t, b_proj):
    """x: (B, T, C); wq/wk/wv: (N_HEAD, C, HEAD); w_proj_t: (C, C) = W_proj.T; b_proj: (1, C)."""
    B, T, C = x.shape
    assert C == EMB and T <= SEQ_MAX

    # Trace-time weight prep (once per call): fuse all heads into 128-wide matmuls and
    # fold the 1/sqrt(C) score scale into Wq (module scales by sqrt(emb), not sqrt(head)).
    scale = 1.0 / math.sqrt(C)
    wq2 = jnp.transpose(wq, (1, 0, 2)).reshape(C, C) * scale             # (C, C)
    wk2 = jnp.transpose(wk, (1, 0, 2)).reshape(C, C)
    wv2 = jnp.transpose(wv, (1, 0, 2)).reshape(C, C)
    wqkv = jnp.concatenate([wq2, wk2, wv2], axis=1)                      # (C, 3C)

    return pl.pallas_call(
        _mha_kernel,
        out_shape=jax.ShapeDtypeStruct((B, T, C), x.dtype),
        grid=(B,),
        in_specs=[
            pl.BlockSpec((1, T, C), lambda b: (b, 0, 0)),
            pl.BlockSpec((C, 3 * C), lambda b: (0, 0)),
            pl.BlockSpec((C, C), lambda b: (0, 0)),
            pl.BlockSpec((1, C), lambda b: (0, 0)),
        ],
        out_specs=pl.BlockSpec((1, T, C), lambda b: (b, 0, 0)),
        compiler_params=pltpu.CompilerParams(
            # B=2 maps across v7x's two TensorCores; single step per core otherwise.
            dimension_semantics=("parallel",)),
    )(x, wqkv, w_proj_t, b_proj)


def _reference(x, wq, wk, wv, w_proj_t, b_proj):
    """Pure-JAX reference mirroring the PyTorch forward (eval mode)."""
    B, T, C = x.shape
    q = jnp.einsum('btc,hcd->bhtd', x, wq)
    k = jnp.einsum('btc,hcd->bhtd', x, wk)
    v = jnp.einsum('btc,hcd->bhtd', x, wv)
    scores = jnp.einsum('bhtd,bhsd->bhts', q, k) / (C ** 0.5)
    mask = jnp.tril(jnp.ones((T, T)))
    scores = jnp.where(mask == 0, -jnp.inf, scores)
    w = jax.nn.softmax(scores, axis=-1)
    o = jnp.einsum('bhts,bhsd->bhtd', w, v)
    y = jnp.transpose(o, (0, 2, 1, 3)).reshape(B, T, C)
    return y @ w_proj_t + b_proj[0]


if __name__ == "__main__":
    key = jax.random.PRNGKey(0)
    kx, kq, kk, kv, kw, kb = jax.random.split(key, 6)

    B, T = 2, 8                     # small sequence (<= sequence_len = 64)
    x = jax.random.normal(kx, (B, T, EMB), dtype=jnp.float32)

    # Deterministic parameter init (synthetic; shapes match nn.Linear layers).
    wq = 0.02 * jax.random.normal(kq, (N_HEAD, EMB, HEAD), dtype=jnp.float32)
    wk = 0.02 * jax.random.normal(kk, (N_HEAD, EMB, HEAD), dtype=jnp.float32)
    wv = 0.02 * jax.random.normal(kv, (N_HEAD, EMB, HEAD), dtype=jnp.float32)
    w_proj_t = 0.02 * jax.random.normal(kw, (EMB, EMB), dtype=jnp.float32)   # = W_proj.T
    b_proj = 0.02 * jax.random.normal(kb, (1, EMB), dtype=jnp.float32)

    out = masked_multihead_attention(x, wq, wk, wv, w_proj_t, b_proj)
    out = jax.block_until_ready(out)

    ref = _reference(x, wq, wk, wv, w_proj_t, b_proj)
    # Tolerance 1e-3 to allow for the approximate-reciprocal softmax normalization.
    if not jnp.allclose(out, ref, atol=1e-3, rtol=1e-3):
        err = jnp.max(jnp.abs(out - ref))
        raise AssertionError(
            f"Pallas kernel output mismatch vs JAX reference (max abs err {err})")

    print("KERNEL_OK")
</pallas_src>

<mosaic_0001>
module attributes {stable_mosaic.version = 11 : i64} {
  func.func @_mha_kernel(%arg0: i32, %arg1: memref<1x8x128xf32, #tpu.memory_space<vmem>>, %arg2: memref<128x384xf32, #tpu.memory_space<vmem>>, %arg3: memref<128x128xf32, #tpu.memory_space<vmem>>, %arg4: memref<1x128xf32, #tpu.memory_space<vmem>>, %arg5: memref<1x8x128xf32, #tpu.memory_space<vmem>>) attributes {dimension_semantics = [#tpu.dimension_semantics<parallel>], iteration_bounds = array<i64: 2>, scalar_prefetch = 0 : i64, scratch_operands = 0 : i64, tpu.core_type = #tpu.core_type<tc>, window_params = [{transform_indices = @transform_0, window_bounds = array<i64: 1, 8, 128>}, {pipeline_mode = #tpu.pipeline_mode<synchronous>, transform_indices = @transform_1, window_bounds = array<i64: 128, 384>}, {pipeline_mode = #tpu.pipeline_mode<synchronous>, transform_indices = @transform_2, window_bounds = array<i64: 128, 128>}, {pipeline_mode = #tpu.pipeline_mode<synchronous>, transform_indices = @transform_3, window_bounds = array<i64: 1, 128>}, {transform_indices = @transform_4, window_bounds = array<i64: 1, 8, 128>}]} {
    %c0 = arith.constant 0 : index
    %c0_0 = arith.constant 0 : index
    %c0_1 = arith.constant 0 : index
    %0 = vector.load %arg1[%c0, %c0_0, %c0_1] : memref<1x8x128xf32, #tpu.memory_space<vmem>>, vector<1x8x128xf32>
    %1 = vector.shape_cast %0 : vector<1x8x128xf32> to vector<8x128xf32>
    %c0_2 = arith.constant 0 : index
    %c0_3 = arith.constant 0 : index
    %2 = vector.load %arg2[%c0_2, %c0_3] : memref<128x384xf32, #tpu.memory_space<vmem>>, vector<128x384xf32>
    %cst = arith.constant dense<0.000000e+00> : vector<8x384xf32>
    %3 = tpu.matmul %1, %2, %cst {dimension_numbers = #tpu.dot_dimension_numbers<[1], [0], [0], [1], [0, 0, 1, 1], [], []>} : vector<8x128xf32>, vector<128x384xf32>, vector<8x384xf32> -> vector<8x384xf32>
    %4 = vector.extract_strided_slice %3 {offsets = [0, 0], sizes = [8, 128], strides = [1, 1]} : vector<8x384xf32> to vector<8x128xf32>
    %5 = vector.extract_strided_slice %3 {offsets = [0, 128], sizes = [8, 128], strides = [1, 1]} : vector<8x384xf32> to vector<8x128xf32>
    %6 = vector.extract_strided_slice %3 {offsets = [0, 256], sizes = [8, 128], strides = [1, 1]} : vector<8x384xf32> to vector<8x128xf32>
    %7 = vector.shape_cast %4 : vector<8x128xf32> to vector<8x16x8xf32>
    %8 = tpu.transpose %7, [1, 0, 2] : vector<8x16x8xf32> -> vector<16x8x8xf32>
    %9 = vector.shape_cast %5 : vector<8x128xf32> to vector<8x16x8xf32>
    %10 = tpu.transpose %9, [1, 0, 2] : vector<8x16x8xf32> -> vector<16x8x8xf32>
    %11 = vector.shape_cast %6 : vector<8x128xf32> to vector<8x16x8xf32>
    %12 = tpu.transpose %11, [1, 0, 2] : vector<8x16x8xf32> -> vector<16x8x8xf32>
    "tpu.trace_start"() <{level = 10 : i32, message = "htd,hsd->hts"}> : () -> ()
    %cst_4 = arith.constant dense<0.000000e+00> : vector<16x8x8xf32>
    %13 = tpu.matmul %8, %10, %cst_4 {dimension_numbers = #tpu.dot_dimension_numbers<[2], [2], [1], [1], [0, 0, 0, 1, 1, 1], [0], [0]>} : vector<16x8x8xf32>, vector<16x8x8xf32>, vector<16x8x8xf32> -> vector<16x8x8xf32>
    "tpu.trace_stop"() : () -> ()
    %14 = tpu.iota {dimensions = array<i32: 1>} : vector<16x8x8xi32>
    %15 = tpu.iota {dimensions = array<i32: 2>} : vector<16x8x8xi32>
    %16 = arith.cmpi sle, %15, %14 : vector<16x8x8xi32>
    %cst_5 = arith.constant -1.000000e+30 : f32
    %17 = vector.broadcast %cst_5 : f32 to vector<16x8x8xf32>
    %18 = arith.select %16, %13, %17 : vector<16x8x8xi1>, vector<16x8x8xf32>
    %cst_6 = arith.constant dense<0xFF800000> : vector<16x8xf32>
    %19 = vector.multi_reduction <maximumf>, %18, %cst_6 [2] : vector<16x8x8xf32> to vector<16x8xf32>
    %20 = vector.shape_cast %19 : vector<16x8xf32> to vector<16x8x1xf32>
    %21 = vector.broadcast %20 : vector<16x8x1xf32> to vector<16x8x8xf32>
    %22 = arith.subf %18, %21 : vector<16x8x8xf32>
    %23 = math.exp %22 : vector<16x8x8xf32>
    %cst_7 = arith.constant dense<0.000000e+00> : vector<16x8xf32>
    %24 = vector.multi_reduction <add>, %23, %cst_7 [2] : vector<16x8x8xf32> to vector<16x8xf32>
    %25 = vector.shape_cast %24 : vector<16x8xf32> to vector<16x8x1xf32>
    %26 = tpu.reciprocal %25 {approx = true} : vector<16x8x1xf32> -> vector<16x8x1xf32>
    %27 = vector.broadcast %26 : vector<16x8x1xf32> to vector<16x8x8xf32>
    %28 = arith.mulf %23, %27 : vector<16x8x8xf32>
    "tpu.trace_start"() <{level = 10 : i32, message = "hts,hsd->htd"}> : () -> ()
    %cst_8 = arith.constant dense<0.000000e+00> : vector<16x8x8xf32>
    %29 = tpu.matmul %28, %12, %cst_8 {dimension_numbers = #tpu.dot_dimension_numbers<[2], [1], [1], [2], [0, 0, 0, 1, 1, 2], [0], [0]>} : vector<16x8x8xf32>, vector<16x8x8xf32>, vector<16x8x8xf32> -> vector<16x8x8xf32>
    "tpu.trace_stop"() : () -> ()
    %30 = tpu.transpose %29, [1, 0, 2] : vector<16x8x8xf32> -> vector<8x16x8xf32>
    %31 = vector.shape_cast %30 : vector<8x16x8xf32> to vector<8x128xf32>
    %c0_9 = arith.constant 0 : index
    %c0_10 = arith.constant 0 : index
    %32 = vector.load %arg3[%c0_9, %c0_10] : memref<128x128xf32, #tpu.memory_space<vmem>>, vector<128x128xf32>
    %cst_11 = arith.constant dense<0.000000e+00> : vector<8x128xf32>
    %33 = tpu.matmul %31, %32, %cst_11 {dimension_numbers = #tpu.dot_dimension_numbers<[1], [0], [0], [1], [0, 0, 1, 1], [], []>} : vector<8x128xf32>, vector<128x128xf32>, vector<8x128xf32> -> vector<8x128xf32>
    %c0_12 = arith.constant 0 : index
    %c0_13 = arith.constant 0 : index
    %34 = vector.load %arg4[%c0_12, %c0_13] : memref<1x128xf32, #tpu.memory_space<vmem>>, vector<1x128xf32>
    %35 = vector.broadcast %34 : vector<1x128xf32> to vector<8x128xf32>
    %36 = arith.addf %33, %35 : vector<8x128xf32>
    %c0_14 = arith.constant 0 : index
    %c0_15 = arith.constant 0 : index
    %c0_16 = arith.constant 0 : index
    %37 = vector.load %arg5[%c0_14, %c0_15, %c0_16] : memref<1x8x128xf32, #tpu.memory_space<vmem>>, vector<1x8x128xf32>
    %38 = vector.shape_cast %37 : vector<1x8x128xf32> to vector<8x128xf32>
    %39 = vector.shape_cast %36 : vector<8x128xf32> to vector<1x8x128xf32>
    tpu.vector_store %arg5[%c0_14, %c0_15, %c0_16], %39 {strides = array<i32>} : memref<1x8x128xf32, #tpu.memory_space<vmem>>, vector<1x8x128xf32>,
    return
  }
  func.func @transform_0(%arg0: i32) -> (i32, i32, i32) {
    %c0_i32 = arith.constant 0 : i32
    %c0_i32_0 = arith.constant 0 : i32
    %c0_i32_1 = arith.constant 0 : i32
    return %arg0, %c0_i32, %c0_i32_0 : i32, i32, i32
  }
  func.func @transform_1(%arg0: i32) -> (i32, i32) {
    %c0_i32 = arith.constant 0 : i32
    %c0_i32_0 = arith.constant 0 : i32
    %c0_i32_1 = arith.constant 0 : i32
    return %c0_i32, %c0_i32_0 : i32, i32
  }
  func.func @transform_2(%arg0: i32) -> (i32, i32) {
    %c0_i32 = arith.constant 0 : i32
    %c0_i32_0 = arith.constant 0 : i32
    %c0_i32_1 = arith.constant 0 : i32
    return %c0_i32, %c0_i32_0 : i32, i32
  }
  func.func @transform_3(%arg0: i32) -> (i32, i32) {
    %c0_i32 = arith.constant 0 : i32
    %c0_i32_0 = arith.constant 0 : i32
    %c0_i32_1 = arith.constant 0 : i32
    return %c0_i32, %c0_i32_0 : i32, i32
  }
  func.func @transform_4(%arg0: i32) -> (i32, i32, i32) {
    %c0_i32 = arith.constant 0 : i32
    %c0_i32_0 = arith.constant 0 : i32
    %c0_i32_1 = arith.constant 0 : i32
    return %arg0, %c0_i32, %c0_i32_0 : i32, i32, i32
  }
}

</mosaic_0001>

<bundles_post_ra>
// kernel: tpu_custom_call.1
= control target key start
LH: loop header
LB: loop body
LE: loop exit
PB: predicated region body
PF: predicated region fallthrough
CT: control target
= control target key end

     0   :  { %9 = vsyncpa [#allocation3], 0  ;;  %s7803_s0 = inlined_call_operand.hbm [shape: f32[2,8,128], index: 0, kind: input, shape index: {}]   ;;  %s7804_s1 = inlined_call_operand.hbm [shape: f32[128,384], index: 1, kind: input, shape index: {}]   ;;  %s7805_s2 = inlined_call_operand.hbm [shape: f32[128,128], index: 2, kind: input, shape index: {}]   ;;  %s7806_s3 = inlined_call_operand.vmem [shape: f32[1,128], index: 3, kind: input, shape index: {}]   ;;  %s7807_s4 = inlined_call_operand.hbm [shape: f32[2,8,128], index: 4, kind: output, shape index: {}]  }
   0x1   :  { %11 = vsyncpa [#allocation3 + $0x1], 0 }
   0x2   :  { %12 = vsyncpa [#allocation6], 0 }
   0x3   :  { %13 = vsyncpa [#allocation4], 0 }
   0x4   :  { %15 = vsyncpa [#allocation4 + $0x1], 0  ;;  %s6517_s15 = smov 0   ;;  %s6519_s16 = smov 0  }
   0x5   :  { %s6521_s17 = smov 0   ;;  %s6523_s18 = smov 0  }
   0x6 LB: > { %s6538_s19 = sadd.s32 4294967295, %s6462_s18   ;;  %s5614_s20 = sadd.s32 4294967294, %s6462_s18   ;;  %s6462_s18 = sphi %s6523_s18, %s7829_s18   ;;  %s6458_s17 = sphi %s6521_s17, %s7828_s17   ;;  %s6454_s16 = sphi %s6519_s16, %s7827_s16   ;;  %s6450_s15 = sphi %s6517_s15, %s7826_s15  }
   0x7   : > { %p41_p0 = scmp.ne.s32.totalorder %s6454_s16, %s6450_s15  ;;  %p7808_p1 = scmp.eq.s32.totalorder %s6538_s19, 0 }
   0x8   : > { %p134_p3 = scmp.eq.s32.totalorder %s5614_s20, 1  ;;  %p5615_p5 = scmp.ge.s32.totalorder %s6462_s18, 1 }
   0x9   : > { %p6547_p4 = por %p7808_p1, %p41_p0  ;;  %p141_p7 = scmp.lt.s32.totalorder %s6462_s18, 3 }
   0xa   : > { %p6552_p6 = por %p134_p3, %p41_p0  ;;  %s6464_s24 = smov [#allocation5]  }
   0xb   : > { %s7811_s21 = scalar_select %p6547_p4, 1, 0 }
   0xc   : > { %s7812_s22 = scalar_select %p6552_p6, 1, 0 }
   0xd   : > { %p6557_p8 = pnand %p5615_p5, %p141_p7  ;;  %s153_s25 = sshll.u32 %s6464_s24, 4  ;;  %s6561_s25 = int_to_ptr.vmem [resolvable:$true] %s153_s25 }
   0xe   : > { %s6465_s27 = smov [#allocation7]   ;;  %s6306_s5 = scalar_lea.hbm %s7804_s1, 6144 }
   0xf   : > { %p6163_p9 = pneg %p6557_p8  ;;  %s166_s28 = sshll.u32 %s6465_s27, 4  ;;  %s6572_s28 = int_to_ptr.vmem [resolvable:$true] %s166_s28 }
  0x10   : > { %p6307_p12 = scmp.ne.s32.totalorder %s7804_s1, %s6306_s5  ;;  %p6313_p5 = scmp.lt.u32.totalorder %s6306_s5, %s7804_s1 }
  0x11   : > { %p6568_p11 = pnand %p6163_p9, %p7808_p1 }
  0x13   : > { %p6308_p13 = pneg %p6568_p11 }
  0x15   : > { %p6309_p0 = pnand %p6308_p13, %p6307_p12 }
  0x17   : > { %p6310_p3 = pneg %p6309_p0 }
  0x19   : > { %p6315_p7 = pnand %p6313_p5, %p6310_p3 }
  0x1b   : > { %6318 = shalt.err (!%p6315_p7)
}
  0x1c   : > { %s6319_s10 = scalar_lea.vmem %s6561_s25, 6144  ;;  %p6327_p2 = scmp.lt.s32.totalorder %s6561_s25, %s6561_s25 }
  0x1d   : > { %p6320_p9 = scmp.ne.s32.totalorder %s6561_s25, %s6319_s10  ;;  %p6328_p12 = scmp.lt.s32.totalorder %s6319_s10, %s6319_s10 }
  0x1f   : > { %p6322_p10 = pnand %p6320_p9, %p6308_p13  ;;  %p6329_p0 = por %p6328_p12, %p6327_p2 }
  0x21   : > { %p6323_p1 = pneg %p6322_p10 }
  0x23   : > { %p6330_p6 = pnand %p6329_p0, %p6323_p1 }
  0x25   : > { %6333 = shalt.err (!%p6330_p6)
}
  0x26   : > { %s6466_s11 = smov 384   ;;  %s6467_s12 = smov 24  }
  0x27   : > { %6166 = dma.hbm_to_vmem [thread:$0]  (!%p6568_p11), %s7804_s1, 6144, %s6561_s25, [#allocation6], %s6466_s11, %s6466_s11, %s6467_s12  }
  0x28   : > { %s6334_s27 = scalar_lea.hbm %s7805_s2, 2048 }
  0x29   : > { %p6335_p2 = scmp.ne.s32.totalorder %s7805_s2, %s6334_s27  ;;  %p6341_p10 = scmp.lt.u32.totalorder %s6334_s27, %s7805_s2 }
  0x2b   : > { %p6337_p1 = pnand %p6335_p2, %p6308_p13 }
  0x2d   : > { %p6338_p6 = pneg %p6337_p1 }
  0x2f   : > { %p6343_p3 = pnand %p6341_p10, %p6338_p6 }
  0x31   : > { %6346 = shalt.err (!%p6343_p3)
}
  0x32   : > { %s6347_s25 = scalar_lea.vmem %s6572_s28, 2048  ;;  %p6355_p12 = scmp.lt.s32.totalorder %s6572_s28, %s6572_s28 }
  0x33   : > { %p6348_p5 = scmp.ne.s32.totalorder %s6572_s28, %s6347_s25  ;;  %p6356_p0 = scmp.lt.s32.totalorder %s6347_s25, %s6347_s25 }
  0x35   : > { %p6350_p7 = pnand %p6348_p5, %p6308_p13  ;;  %p6357_p2 = por %p6356_p0, %p6355_p12 }
  0x37   : > { %p6351_p9 = pneg %p6350_p7 }
  0x39   : > { %p6358_p1 = pnand %p6357_p2, %p6351_p9 }
  0x3b   : > { %6361 = shalt.err (!%p6358_p1)
}
  0x3c   : > { %s6468_s7 = smov 128   ;;  %s6469_s8 = smov 8  }
  0x3d   : > { %6169 = dma.hbm_to_vmem [thread:$0]  (!%p6568_p11), %s7805_s2, 2048, %s6572_s28, [#allocation6], %s6468_s7, %s6468_s7, %s6469_s8  }
  0x3e   : > { %s6627_s11 = sadd.s32 1, %s6462_s18   ;;  %s28_s13 = sadd.s32 1, %s6458_s17 }
  0x3f   : > { %s25_s12 = ssub.s32 %s6462_s18, %s6627_s11  ;;  %p35_p6 = scmp.ne.s32.totalorder %s6458_s17, %s6454_s16 }
  0x40   : > { %p26_p13 = scmp.eq.s32.totalorder %s25_s12, 0  ;;  %p36_p10 = scmp.eq.s32.totalorder %s6462_s18, 0 }
  0x41   : > { %p7815_p5 = scmp.eq.s32.totalorder %s6538_s19, 1  ;;  %p6180_p9 = scmp.lt.s32.totalorder %s6462_s18, 2 }
  0x42   : > { %s6636_s14 = scalar_select %p26_p13, %s6458_s17, %s28_s13  }
  0x43   : > { %p37_p3 = por %p36_p10, %p35_p6  ;;  %p6640_p7 = por %p7815_p5, %p35_p6 }
  0x44   : > { %s183_s26 = sand.u32 1, %s6458_s17   ;;  %s5620_s28 = sshll.u32 %s6462_s18, 7 }
  0x45   : > { %s7816_s20 = scalar_select %p6640_p7, 1, 0 }
  0x46   : > { %s5619_s24 = sshll.u32 %s183_s26, 3  ;;  %s6650_s30 = scalar_lea.hbm %s7803_s0, %s5620_s28 }
  0x47   : > { %s187_s5 = scalar_lea.vmem [#allocation2], %s5619_s24  ;;  %p6654_p11 = pnand %p6180_p9, %p37_p3 }
  0x48   : > { %s194_s6 = sshll.u32 %s187_s5, 4  ;;  %s184_s7 = scalar_lea.sflag [#allocation3], %s183_s26  ;;  %s6652_s6 = int_to_ptr.vmem [resolvable:$true] %s194_s6 }
  0x49   : > { %s6362_s8 = scalar_lea.hbm %s6650_s30, 128  ;;  %p6364_p0 = pneg %p6654_p11 }
  0x4a   : > { %p6363_p12 = scmp.ne.s32.totalorder %s6650_s30, %s6362_s8  ;;  %s6367_s12 = scalar_lea.hbm %s7803_s0, 256 }
  0x4b   : > { %p6368_p13 = scmp.lt.u32.totalorder %s6650_s30, %s7803_s0  ;;  %p6369_p6 = scmp.lt.u32.totalorder %s6367_s12, %s6362_s8 }
  0x4c   : > { %p6365_p2 = pnand %p6364_p0, %p6363_p12  ;;  %p6371_p3 = scmp.lt.u32.totalorder %s6362_s8, %s6650_s30 }
  0x4d   : > { %p6370_p10 = por %p6369_p6, %p6368_p13 }
  0x4e   : > { %p6366_p1 = pneg %p6365_p2 }
  0x4f   : > { %p6372_p5 = por %p6371_p3, %p6370_p10 }
  0x51   : > { %p6373_p9 = pnand %p6372_p5, %p6366_p1 }
  0x53   : > { %6376 = shalt.err (!%p6373_p9)
}
  0x54   : > { %s6377_s26 = scalar_lea.vmem %s6652_s6, 128  ;;  %s6470_s28 = smov [#allocation2]  }
  0x55   : > { %p6378_p12 = scmp.ne.s32.totalorder %s6652_s6, %s6377_s26  ;;  %s6382_s27 = sshll.u32 %s6470_s28, 4  ;;  %s6383_s27 = int_to_ptr.vmem [resolvable:$false] %s6382_s27 }
  0x56   : > { %s6384_s29 = scalar_lea.vmem %s6383_s27, 256  ;;  %p6385_p4 = scmp.lt.s32.totalorder %s6652_s6, %s6383_s27 }
  0x57   : > { %p6380_p2 = pnand %p6378_p12, %p6364_p0  ;;  %p6386_p13 = scmp.lt.s32.totalorder %s6384_s29, %s6377_s26 }
  0x59   : > { %p6381_p7 = pneg %p6380_p2  ;;  %p6387_p6 = por %p6386_p13, %p6385_p4 }
  0x5b   : > { %p6388_p10 = pnand %p6387_p6, %p6381_p7 }
  0x5d   : > { %6391 = shalt.err (!%p6388_p10)
}
  0x5e   : > { %6173 = dma.hbm_to_vmem [thread:$0]  (!%p6654_p11), %s6650_s30, 128, %s6652_s6, %s184_s7  }
  0x5f   : > { %203 = sbr.rel (%p6557_p8) target bundleno = 1698 (0x6a2), region = 36  ;;  %s6686_s5 = sand.u32 (!%p6557_p8), 1, %s6454_s16  }
  0x60   : > { %s5622_s8 = sshll.u32 (!%p6557_p8), %s6686_s5, 3  ;;  %s206_s9 = scalar_lea.sflag (!%p6557_p8), [#allocation3], %s6686_s5 }
  0x61   : > { %s6692_s10 = scalar_lea.vmem (!%p6557_p8), [#allocation2], %s5622_s8  ;;  %p7818_p4 = scmp.ne.s32.totalorder (!%p6557_p8), %s7811_s21, 0 }
  0x66   : > { %6437 = dma.done.wait (%p7818_p4), %s206_s9, 128  }
  0x67   : > { %6439 = vsyncadd (%p7818_p4), %s206_s9, 4294967168  ;;  %p7819_p7 = scmp.eq.s32.totalorder %s6538_s19, 0 }
  0x69   : > { %6441 = dma.done.wait (%p7819_p7), [#allocation6], 8192   ;;  %p7820_p8 = pmov %p7819_p7 }
  0x6a   : > { %v6471_v0 = vmov 0.0   ;;  %v6472_v1 = vmov 0.0|0.0   ;;  %v244_v2 = vld [vmem:[#allocation5 + $0x8] sm:$0xff]  ;;  %v247_v3 = vld [vmem:[#allocation5 + $0x20] sm:$0xff]  ;;  %v246_v6 = vld [vmem:[#allocation5 + $0x18] sm:$0xff]  ;;  %vm6473_vm0 = vmmov 0  }
  0x6b   : > { %6443 = vsyncadd (%p7820_p8), [#allocation6], 4294959104  ;;  %355 = vmatprep.mubr.f32.mxu0 %v6471_v0  ;;  %6103 = vmatprep.subr.bf16.mxu1 %v6472_v1  ;;  %v243_v4 = vld [vmem:[#allocation5] sm:$0xff]  ;;  %v6071_v5 = vpack.c.bf16 %v247_v3, %v244_v2  ;;  %v250_v7 = vld [vmem:[#allocation5 + $0x38] sm:$0xff]  ;;  %s6474_s21 = smov 112   ;;  %s6475_s23 = smov 120  }
  0x6c   : > { %v253_v8 = vld [vmem:[#allocation5 + $0x50] sm:$0xff]  ;;  %v6073_v9 = vpack.c.bf16 %v246_v6, %v243_v4  ;;  %v252_v12 = vld [vmem:[#allocation5 + $0x48] sm:$0xff]  ;;  %v259_v14 = vld [vmem:[#allocation5 + $0x80] sm:$0xff]  ;;  %5873 = vmatprep.mubr.msk.f32.mxu1 %vm6473_vm0, %v6471_v0  ;;  %s6476_s30 = smov 96   ;;  %s6477_s6 = smov 104   ;;  %vm2202_vm1 = vcmask 64512  }
  0x6d   : > { %v6075_v10 = vpack.c.bf16 %v253_v8, %v250_v7  ;;  %v249_v11 = vld [vmem:[#allocation5 + $0x30] sm:$0xff]  ;;  %v256_v13 = vld [vmem:[#allocation5 + $0x68] sm:$0xff]  ;;  %6072 = vmatprep.subr.bf16.mxu0 %v6071_v5  ;;  %v255_v17 = vld [vmem:[#allocation5 + $0x60] sm:$0xff]  ;;  %s6478_s25 = smov 88   ;;  %s6479_s7 = smov 72   ;;  %vm5389_vm3 = vcmask 130048  }
  0x6e   : > { %6074 = vmatpush1.bf16.msra.mxu0 %v6073_v9  ;;  %v6077_v15 = vpack.c.bf16 %v252_v12, %v249_v11  ;;  %v6079_v16 = vpack.c.bf16 %v259_v14, %v256_v13  ;;  %v258_v18 = vld [vmem:[#allocation5 + $0x78] sm:$0xff]  ;;  %v265_v20 = vld [vmem:[#allocation5 + $0xb0] sm:$0xff]  ;;  %v264_v24 = vld [vmem:[#allocation5 + $0xa8] sm:$0xff]  ;;  %s6480_s12 = smov 80   ;;  %s6481_s13 = smov 56   ;;  %vm5391_vm4 = vcmask 195584  }
  0x6f   : > { %6076 = vmatprep.subr.bf16.mxu0 %v6075_v10  ;;  %v262_v19 = vld [vmem:[#allocation5 + $0x98] sm:$0xff]  ;;  %v6081_v21 = vpack.c.bf16 %v258_v18, %v255_v17  ;;  %v261_v23 = vld [vmem:[#allocation5 + $0x90] sm:$0xff]  ;;  %v268_v25 = vld [vmem:[#allocation5 + $0xc8] sm:$0xff]  ;;  %s6482_s24 = smov 64   ;;  %s6483_s26 = smov 40   ;;  %vm5393_vm5 = vcmask 261120  }
  0x70   : > { %v6083_v22 = vpack.c.bf16 %v265_v20, %v262_v19  ;;  %v271_v26 = vld [vmem:[#allocation5 + $0xe0] sm:$0xff]  ;;  %v245_v27 = vld [vmem:[#allocation5 + $0x10] sm:$0xff]  ;;  %v248_v28 = vld [vmem:[#allocation5 + $0x28] sm:$0xff]  ;;  %v6085_v30 = vpack.c.bf16 %v264_v24, %v261_v23  ;;  %s6484_s28 = smov 48   ;;  %s6485_s27 = smov 24   ;;  %v483_v19 = vlaneseq  ;;  %vm5395_vm6 = vcmask 326656  }
  0x71   : > { %v251_v29 = vld [vmem:[#allocation5 + $0x40] sm:$0xff]  ;;  %v6104_v31 = vpack.c.bf16 %v248_v28, %v245_v27  ;;  %v254_v32 = vld [vmem:[#allocation5 + $0x58] sm:$0xff]  ;;  %v6087_v33 = vpack.c.bf16 %v271_v26, %v268_v25  ;;  %v277_v37 = vld [vmem:[#allocation5 + $0x110] sm:$0xff]  ;;  %s6486_s29 = smov 32   ;;  %s6487_s9 = smov 8   ;;  %vm5397_vm7 = vcmask 392192  }
  0x72   : > { %6078 = vmatpush1.bf16.msra.mxu0 %v6077_v15  ;;  %v267_v34 = vld [vmem:[#allocation5 + $0xc0] sm:$0xff]  ;;  %v270_v35 = vld [vmem:[#allocation5 + $0xd8] sm:$0xff]  ;;  %v6107_v38 = vpack.c.bf16 %v254_v32, %v251_v29  ;;  %v257_v39 = vld [vmem:[#allocation5 + $0x70] sm:$0xff]  ;;  %v6489_v17 = vmov 1983009808   ;;  %v6809_v23 = vshrl.u32 %v483_v19, 7 }
  0x73   : > { %6080 = vmatprep.subr.bf16.mxu0 %v6079_v16  ;;  %v274_v36 = vld [vmem:[#allocation5 + $0xf8] sm:$0xff]  ;;  %6105 = vmatpush3.bf16.msra.mxu1 %v6104_v31  ;;  %v260_v40 = vld [vmem:[#allocation5 + $0x88] sm:$0xff]  ;;  %v6089_v41 = vpack.c.bf16 %v270_v35, %v267_v34  ;;  %v273_v43 = vld [vmem:[#allocation5 + $0xf0] sm:$0xff]  ;;  %v481_v18 = vunpack.c.l.s4 %v6489_v17  ;;  %v6490_v20 = vmov 1934713408   ;;  %vm5399_vm8 = vcmask 457728  }
  0x74   : > { %6106 = vmatprep.subr.bf16.mxu1 %v6472_v1  ;;  %v6091_v42 = vpack.c.bf16 %v277_v37, %v274_v36  ;;  %v276_v44 = vld [vmem:[#allocation5 + $0x108] sm:$0xff]  ;;  %v283_v46 = vld [vmem:[#allocation5 + $0x140] sm:$0xff]  ;;  %v6110_v47 = vpack.c.bf16 %v260_v40, %v257_v39  ;;  %v266_v49 = vld [vmem:[#allocation5 + $0xb8] sm:$0xff]  ;;  %vm5401_vm9 = vcmask 523264   ;;  %vm5403_vm10 = vcmask 588800   ;;  %p7823_p0 = scmp.ne.s32.totalorder %s7816_s20, 0 }
  0x75   : > { %v280_v45 = vld [vmem:[#allocation5 + $0x128] sm:$0xff]  ;;  %v263_v48 = vld [vmem:[#allocation5 + $0xa0] sm:$0xff]  ;;  %v6093_v50 = vpack.c.bf16 %v276_v44, %v273_v43  ;;  %v282_v53 = vld [vmem:[#allocation5 + $0x138] sm:$0xff]  ;;  %vm5405_vm11 = vcmask 654336   ;;  %vm5407_vm12 = vcmask 719872   ;;  %vm5409_vm13 = vcmask 785408  }
  0x76   : > { %6082 = vmatpush1.bf16.msra.mxu0 %v6081_v21  ;;  %v6095_v51 = vpack.c.bf16 %v283_v46, %v280_v45  ;;  %v279_v52 = vld [vmem:[#allocation5 + $0x120] sm:$0xff]  ;;  %v286_v54 = vld [vmem:[#allocation5 + $0x158] sm:$0xff]  ;;  %v289_v55 = vld [vmem:[#allocation5 + $0x170] sm:$0xff]  ;;  %v6113_v56 = vpack.c.bf16 %v266_v49, %v263_v48  ;;  %v545_v21 = vunpack.c.l.s4 %v6490_v20  ;;  %vm5411_vm14 = vcmask 850944  }
  0x77   : > { %6084 = vmatprep.subr.bf16.mxu0 %v6083_v22  ;;  %6108 = vmatpush3.bf16.msra.mxu1 %v6107_v38  ;;  %v269_v57 = vld [vmem:[#allocation5 + $0xd0] sm:$0xff]  ;;  %v272_v58 = vld [vmem:[#allocation5 + $0xe8] sm:$0xff]  ;;  %v6097_v59 = vpack.c.bf16 %v282_v53, %v279_v52  ;;  %v6099_v60 = vpack.c.bf16 %v289_v55, %v286_v54  ;;  %v275_v2 = vld [vmem:[#allocation5 + $0x100] sm:$0xff]  ;;  %v482_v22 = vunpack.c.0.s8 %v481_v18  ;;  %vm5413_vm15 = vcmask 916480  }
  0x78   : > { %6109 = vmatprep.subr.bf16.mxu1 %v6472_v1  ;;  %v285_v61 = vld [vmem:[#allocation5 + $0x150] sm:$0xff]  ;;  %v288_v62 = vld [vmem:[#allocation5 + $0x168] sm:$0xff]  ;;  %v6116_v63 = vpack.c.bf16 %v272_v58, %v269_v57  ;;  %v278_v3 = vld [vmem:[#allocation5 + $0x118] sm:$0xff]  ;;  %v546_v26 = vunpack.c.0.s8 %v545_v21 }
  0x79   : > { %v6101_v4 = vpack.c.bf16 %v288_v62, %v285_v61  ;;  %v6119_v5 = vpack.c.bf16 %v278_v3, %v275_v2  ;;  %v242_v6 = vld [vmem:[%s6692_s10] sm:$0xff]  ;;  %v284_v8 = vld [vmem:[#allocation5 + $0x148] sm:$0xff]  ;;  %v287_v10 = vld [vmem:[#allocation5 + $0x160] sm:$0xff]  ;;  %s6488_s10 = smov 16   ;;  %v6812_v27 = vsub.s32 %v482_v22, %v6809_v23 }
  0x7a   : > { %6086 = vmatpush1.bf16.msra.mxu0 %v6085_v30  ;;  %v281_v7 = vld [vmem:[#allocation5 + $0x130] sm:$0xff]  ;;  %v290_v11 = vld [vmem:[#allocation5 + $0x178] sm:$0xff]  ;;  %v6817_v34 = vsub.s32 %v546_v26, %v6809_v23 }
  0x7b   : > { %6088 = vmatprep.subr.bf16.mxu0 %v6087_v33  ;;  %6111 = vmatpush3.bf16.msra.mxu1 %v6110_v47  ;;  %v6122_v9 = vpack.c.bf16 %v284_v8, %v281_v7  ;;  %v6125_v12 = vpack.c.bf16 %v290_v11, %v287_v10 }
  0x7c   : > { %6112 = vmatprep.subr.bf16.mxu1 %v6472_v1 }
  0x7e   : > { %6090 = vmatpush1.bf16.msra.mxu0 %v6089_v41 }
  0x7f   : > { %6092 = vmatprep.subr.bf16.mxu0 %v6091_v42  ;;  %6114 = vmatpush3.bf16.msra.mxu1 %v6113_v56 }
  0x80   : > { %6115 = vmatprep.subr.bf16.mxu1 %v6472_v1 }
  0x82   : > { %6094 = vmatpush1.bf16.msra.mxu0 %v6093_v50 }
  0x83   : > { %6096 = vmatprep.subr.bf16.mxu0 %v6095_v51  ;;  %6117 = vmatpush3.bf16.msra.mxu1 %v6116_v63 }
  0x84   : > { %6118 = vmatprep.subr.bf16.mxu1 %v6472_v1 }
  0x86   : > { %6098 = vmatpush1.bf16.msra.mxu0 %v6097_v59 }
  0x87   : > { %6100 = vmatprep.subr.bf16.mxu0 %v6099_v60  ;;  %6120 = vmatpush3.bf16.msra.mxu1 %v6119_v5 }
  0x88   : > { %6121 = vmatprep.subr.bf16.mxu1 %v6472_v1 }
  0x8a   : > { %6102 = vmatpush1.bf16.msra.mxu0 %v6101_v4 }
  0x8b   : > { %5916 = vmatprep.subr.mxu0 %v6471_v0  ;;  %6123 = vmatpush3.bf16.msra.mxu1 %v6122_v9 }
  0x8c   : > { %6124 = vmatprep.subr.bf16.mxu1 %v6472_v1 }
  0x8d   : > { %356 = vmatmul.mubr.f32.vlgmr.msra.gmra.mrb[0].mxu0 %v242_v6 }
  0x8e   : > { %5918 = vmatprep.mubr.msk.f32.mxu0 %vm6473_vm0, %v6471_v0 }
  0x8f   : > { %6126 = vmatpush3.bf16.msra.mxu1 %v6125_v12 }
  0x90   : > { %5876 = vmatprep.subr.mxu1 %v6471_v0 }
  0x92   : > { %5874 = vmatmul.mubr.f32.vlgmr.msra.gmra.mrb[0].mxu1 %v242_v6 }
  0x93   : > { %5878 = vmatprep.mubr.msk.f32.mxu1 %vm6473_vm0, %v6471_v0 }
 0x160   : > { %v6720_v13 = vpop.f32.mrb[0].mxu0 }
 0x161   : > { %436 = vrot.lane.b32.xlu0 %v6720_v13, %s6474_s21  ;;  %433 = vrot.lane.b32.xlu1 %v6720_v13, %s6475_s23  ;;  %v6726_v14 = vpop.f32.mrb[1].mxu0 }
 0x165   : > { %442 = vrot.lane.b32.xlu0 %v6720_v13, %s6476_s30  ;;  %439 = vrot.lane.b32.xlu1 %v6720_v13, %s6477_s6  ;;  %v6784_v15 = vpop.f32.mrb[0].mxu1 }
 0x166   : > { %v5875_v16 = vpop.f32.mrb[1].mxu1 }
 0x169   : > { %445 = vrot.lane.b32.xlu1 %v6720_v13, %s6478_s25  ;;  %1023 = vrot.lane.b32.xlu0 %v6726_v14, %s6475_s23 }
 0x16d   : > { %1029 = vrot.lane.b32.xlu1 %v6726_v14, %s6477_s6  ;;  %1026 = vrot.lane.b32.xlu0 %v6726_v14, %s6474_s21 }
 0x171   : > { %451 = vrot.lane.b32.xlu1 %v6720_v13, %s6479_s7  ;;  %448 = vrot.lane.b32.xlu0 %v6720_v13, %s6480_s12 }
 0x175   : > { %457 = vrot.lane.b32.xlu1 %v6720_v13, %s6481_s13  ;;  %454 = vrot.lane.b32.xlu0 %v6720_v13, %s6482_s24 }
 0x179   : > { %1035 = vrot.lane.b32.xlu1 %v6726_v14, %s6478_s25  ;;  %1032 = vrot.lane.b32.xlu0 %v6726_v14, %s6476_s30 }
 0x17d   : > { %1041 = vrot.lane.b32.xlu1 %v6726_v14, %s6479_s7  ;;  %1038 = vrot.lane.b32.xlu0 %v6726_v14, %s6480_s12 }
 0x181   : > { %463 = vrot.lane.b32.xlu1 %v6720_v13, %s6483_s26  ;;  %460 = vrot.lane.b32.xlu0 %v6720_v13, %s6484_s28 }
 0x185   : > { %469 = vrot.lane.b32.xlu1 %v6720_v13, %s6485_s27  ;;  %466 = vrot.lane.b32.xlu0 %v6720_v13, %s6486_s29 }
 0x189   : > { %1047 = vrot.lane.b32.xlu1 %v6726_v14, %s6481_s13  ;;  %1044 = vrot.lane.b32.xlu0 %v6726_v14, %s6482_s24 }
 0x18d   : > { %1053 = vrot.lane.b32.xlu1 %v6726_v14, %s6483_s26  ;;  %1050 = vrot.lane.b32.xlu0 %v6726_v14, %s6484_s28 }
 0x191   : > { %1059 = vrot.lane.b32.xlu1 %v6726_v14, %s6485_s27  ;;  %1056 = vrot.lane.b32.xlu0 %v6726_v14, %s6486_s29 }
 0x195   : > { %1065 = vrot.lane.b32.xlu1 %v6726_v14, %s6487_s9  ;;  %1062 = vrot.lane.b32.xlu0 %v6726_v14, %s6488_s10 }
 0x199   : > { %475 = vrot.lane.b32.xlu1 %v6720_v13, %s6487_s9  ;;  %472 = vrot.lane.b32.xlu0 %v6720_v13, %s6488_s10 }
 0x19d   : > { %1613 = vrot.lane.b32.xlu1 %v6784_v15, %s6475_s23  ;;  %1616 = vrot.lane.b32.xlu0 %v6784_v15, %s6474_s21 }
 0x1a1   : > { %1619 = vrot.lane.b32.xlu1 %v6784_v15, %s6477_s6  ;;  %1622 = vrot.lane.b32.xlu0 %v6784_v15, %s6476_s30 }
 0x1a5   : > { %1631 = vrot.lane.b32.xlu0 %v6784_v15, %s6479_s7  ;;  %1625 = vrot.lane.b32.xlu1 %v6784_v15, %s6478_s25 }
 0x1a9   : > { %1634 = vrot.lane.b32.xlu0 %v6784_v15, %s6482_s24  ;;  %1628 = vrot.lane.b32.xlu1 %v6784_v15, %s6480_s12 }
 0x1ad   : > { %1643 = vrot.lane.b32.xlu0 %v6784_v15, %s6483_s26  ;;  %1637 = vrot.lane.b32.xlu1 %v6784_v15, %s6481_s13 }
 0x1b1   : > { %1640 = vrot.lane.b32.xlu1 %v6784_v15, %s6484_s28 }
 0x1d3   : > { %v437_v24 = vpop.permute.xlu0 %436  ;;  %v434_v25 = vpop.permute.xlu1 %433 }
 0x1d4   : > { %v478_v28 = vcombine.low %v6720_v13, %v437_v24  ;;  %v479_v29 = vcombine.high %v6720_v13, %v437_v24 }
 0x1d6   : > { %v486_v35 = vrot.slane %v478_v28, %v6812_v27  ;;  %v493_v36 = vrot.slane %v479_v29, %v6812_v27 }
 0x1d7   : > { %v443_v30 = vpop.permute.xlu0 %442  ;;  %v440_v31 = vpop.permute.xlu1 %439 }
 0x1d8   : > { %v494_v32 = vcombine.low %v434_v25, %v440_v31  ;;  %v495_v33 = vcombine.high %v434_v25, %v440_v31 }
 0x1da   : > { %v502_v37 = vrot.slane %v494_v32, %v6812_v27  ;;  %v509_v38 = vrot.slane %v495_v33, %v6812_v27 }
 0x1db   : > { %v446_v39 = vpop.permute.xlu1 %445  ;;  %v1024_v40 = vpop.permute.xlu0 %1023 }
 0x1dc   : > { %v542_v41 = vcombine.low %v486_v35, %v502_v37  ;;  %v543_v42 = vcombine.high %v486_v35, %v502_v37  ;;  %v558_v43 = vcombine.low %v493_v36, %v509_v38  ;;  %v559_v44 = vcombine.high %v493_v36, %v509_v38 }
 0x1de   : > { %v550_v45 = vrot.slane %v542_v41, %v6817_v34  ;;  %v557_v46 = vrot.slane %v543_v42, %v6817_v34  ;;  %v566_v47 = vrot.slane %v558_v43, %v6817_v34  ;;  %v573_v48 = vrot.slane %v559_v44, %v6817_v34 }
 0x1df   : > { %v1030_v49 = vpop.permute.xlu1 %1029  ;;  %v1027_v50 = vpop.permute.xlu0 %1026 }
 0x1e0   : > { %v5626_v51 = vcombine.low %v550_v45, %v557_v46  ;;  %v5628_v52 = vcombine.high %v550_v45, %v557_v46  ;;  %v5630_v53 = vcombine.low %v566_v47, %v573_v48  ;;  %v5632_v54 = vcombine.high %v566_v47, %v573_v48 }
 0x1e1   : > { %v1084_v55 = vcombine.low %v1024_v40, %v1030_v49  ;;  %v1085_v56 = vcombine.high %v1024_v40, %v1030_v49  ;;  %v1068_v57 = vcombine.low %v6726_v14, %v1027_v50  ;;  %v1069_v58 = vcombine.high %v6726_v14, %v1027_v50 }
 0x1e2   : > { %v6830_v59 = vrot.slane %v5626_v51, %v6812_v27  ;;  %v6833_v60 = vrot.slane %v5628_v52, %v6812_v27  ;;  %v6836_v61 = vrot.slane %v5630_v53, %v6812_v27  ;;  %v6839_v62 = vrot.slane %v5632_v54, %v6812_v27 }
 0x1e3   : > { %v1092_v63 = vrot.slane %v1084_v55, %v6812_v27  ;;  %v1099_v2 = vrot.slane %v1085_v56, %v6812_v27  ;;  %v1076_v3 = vrot.slane %v1068_v57, %v6812_v27  ;;  %v1083_v4 = vrot.slane %v1069_v58, %v6812_v27  ;;  %v452_v5 = vpop.permute.xlu1 %451  ;;  %v449_v6 = vpop.permute.xlu0 %448 }
 0x1e4   : > { %v814_v7 = vcombine.low %v6830_v59, %v6833_v60  ;;  %v846_v8 = vcombine.low %v6836_v61, %v6839_v62  ;;  %v526_v13 = vcombine.low %v446_v39, %v452_v5  ;;  %v527_v14 = vcombine.high %v446_v39, %v452_v5 }
 0x1e5   : > { %v1132_v9 = vcombine.low %v1076_v3, %v1092_v63  ;;  %v1133_v10 = vcombine.high %v1076_v3, %v1092_v63  ;;  %v1148_v11 = vcombine.low %v1083_v4, %v1099_v2  ;;  %v1149_v12 = vcombine.high %v1083_v4, %v1099_v2 }
 0x1e6   : > { %v510_v16 = vcombine.low %v443_v30, %v449_v6  ;;  %v511_v17 = vcombine.high %v443_v30, %v449_v6  ;;  %v534_v26 = vrot.slane %v526_v13, %v6812_v27  ;;  %v541_v28 = vrot.slane %v527_v14, %v6812_v27 }
 0x1e7   : > { %v1140_v18 = vrot.slane %v1132_v9, %v6817_v34  ;;  %v1147_v20 = vrot.slane %v1133_v10, %v6817_v34  ;;  %v1156_v21 = vrot.slane %v1148_v11, %v6817_v34  ;;  %v1163_v22 = vrot.slane %v1149_v12, %v6817_v34  ;;  %v6853_v24 = vpop.permute.xlu1 %457  ;;  %v6855_v25 = vpop.permute.xlu0 %454 }
 0x1e8   : > { %v518_v29 = vrot.slane %v510_v16, %v6812_v27  ;;  %v525_v30 = vrot.slane %v511_v17, %v6812_v27  ;;  %v815_v50 = vcombine.high %v6830_v59, %v6833_v60  ;;  %v847_v51 = vcombine.high %v6836_v61, %v6839_v62 }
 0x1e9   : > { %v5642_v31 = vcombine.low %v1140_v18, %v1147_v20  ;;  %v5644_v32 = vcombine.high %v1140_v18, %v1147_v20  ;;  %v5646_v33 = vcombine.low %v1156_v21, %v1163_v22  ;;  %v5648_v35 = vcombine.high %v1156_v21, %v1163_v22 }
 0x1ea   : > { %v574_v36 = vcombine.low %v518_v29, %v534_v26  ;;  %v575_v37 = vcombine.high %v518_v29, %v534_v26  ;;  %v590_v38 = vcombine.low %v525_v30, %v541_v28  ;;  %v591_v39 = vcombine.high %v525_v30, %v541_v28 }
 0x1eb   : > { %v6862_v40 = vrot.slane %v5642_v31, %v6812_v27  ;;  %v6865_v41 = vrot.slane %v5644_v32, %v6812_v27  ;;  %v6868_v42 = vrot.slane %v5646_v33, %v6812_v27  ;;  %v6871_v43 = vrot.slane %v5648_v35, %v6812_v27  ;;  %v1036_v44 = vpop.permute.xlu1 %1035  ;;  %v1033_v45 = vpop.permute.xlu0 %1032 }
 0x1ec   : > { %v582_v46 = vrot.slane %v574_v36, %v6817_v34  ;;  %v589_v47 = vrot.slane %v575_v37, %v6817_v34  ;;  %v598_v48 = vrot.slane %v590_v38, %v6817_v34  ;;  %v605_v49 = vrot.slane %v591_v39, %v6817_v34 }
 0x1ed   : > { %v1404_v52 = vcombine.low %v6862_v40, %v6865_v41  ;;  %v1436_v53 = vcombine.low %v6868_v42, %v6871_v43  ;;  %v1405_v58 = vcombine.high %v6862_v40, %v6865_v41  ;;  %v1437_v63 = vcombine.high %v6868_v42, %v6871_v43 }
 0x1ee   : > { %v5627_v54 = vcombine.low %v582_v46, %v589_v47  ;;  %v5629_v55 = vcombine.high %v582_v46, %v589_v47  ;;  %v5631_v56 = vcombine.low %v598_v48, %v605_v49  ;;  %v5633_v57 = vcombine.high %v598_v48, %v605_v49 }
 0x1ef   : > { %v1042_v2 = vpop.permute.xlu1 %1041  ;;  %v1039_v3 = vpop.permute.xlu0 %1038  ;;  %v6890_v4 = vrot.slane %v1404_v52, %v6817_v34  ;;  %v6893_v5 = vrot.slane %v1436_v53, %v6817_v34  ;;  %v6902_v10 = vrot.slane %v814_v7, %v6817_v34  ;;  %v6905_v11 = vrot.slane %v846_v8, %v6817_v34 }
 0x1f0   : > { %v6896_v6 = vrot.slane %v5627_v54, %v6812_v27  ;;  %v6899_v9 = vrot.slane %v5629_v55, %v6812_v27  ;;  %v1116_v12 = vcombine.low %v1036_v44, %v1042_v2  ;;  %v1117_v13 = vcombine.high %v1036_v44, %v1042_v2 }
 0x1f1   : > { %v1100_v14 = vcombine.low %v1033_v45, %v1039_v3  ;;  %v1101_v16 = vcombine.high %v1033_v45, %v1039_v3  ;;  %v6908_v17 = vrot.slane %v5631_v56, %v6812_v27  ;;  %v6911_v18 = vrot.slane %v5633_v57, %v6812_v27 }
 0x1f2   : > { %v830_v20 = vcombine.low %v6896_v6, %v6899_v9  ;;  %v831_v7 = vcombine.high %v6896_v6, %v6899_v9  ;;  %v1124_v21 = vrot.slane %v1116_v12, %v6812_v27  ;;  %v1131_v8 = vrot.slane %v1117_v13, %v6812_v27 }
 0x1f3   : > { %v1108_v22 = vrot.slane %v1100_v14, %v6812_v27  ;;  %v1115_v26 = vrot.slane %v1101_v16, %v6812_v27  ;;  %v464_v28 = vpop.permute.xlu1 %463  ;;  %v461_v29 = vpop.permute.xlu0 %460  ;;  %v1468_v30 = vcombine.low %v6890_v4, %v6893_v5  ;;  %v878_v56 = vcombine.low %v6902_v10, %v6905_v11 }
 0x1f4   : > { %v630_v31 = vcombine.low %v6853_v24, %v464_v28  ;;  %v631_v32 = vcombine.high %v6853_v24, %v464_v28  ;;  %v614_v33 = vcombine.low %v6855_v25, %v461_v29  ;;  %v615_v45 = vcombine.high %v6855_v25, %v461_v29 }
 0x1f5   : > { %v1164_v35 = vcombine.low %v1108_v22, %v1124_v21  ;;  %v1165_v36 = vcombine.high %v1108_v22, %v1124_v21  ;;  %v1180_v37 = vcombine.low %v1115_v26, %v1131_v8  ;;  %v1181_v38 = vcombine.high %v1115_v26, %v1131_v8  ;;  %5877 = vmatpush3.xpose.msk.msra.mxu1 %vm2202_vm1, %v1468_v30 }
 0x1f6   : > { %v638_v39 = vrot.slane %v630_v31, %v6812_v27  ;;  %v645_v44 = vrot.slane %v631_v32, %v6812_v27  ;;  %v622_v46 = vrot.slane %v614_v33, %v6812_v27  ;;  %5881 = vmatprep.subr.mxu1 %v6471_v0  ;;  %v629_v54 = vrot.slane %v615_v45, %v6812_v27 }
 0x1f7   : > { %v1172_v47 = vrot.slane %v1164_v35, %v6817_v34  ;;  %v1179_v24 = vrot.slane %v1165_v36, %v6817_v34  ;;  %v1188_v48 = vrot.slane %v1180_v37, %v6817_v34  ;;  %v1195_v49 = vrot.slane %v1181_v38, %v6817_v34  ;;  %v6936_v52 = vpop.permute.xlu1 %469  ;;  %v6938_v53 = vpop.permute.xlu0 %466 }
 0x1f8   : > { %v678_v55 = vcombine.low %v622_v46, %v638_v39  ;;  %v679_v25 = vcombine.high %v622_v46, %v638_v39  ;;  %v694_v16 = vcombine.low %v629_v54, %v645_v44  ;;  %v695_v21 = vcombine.high %v629_v54, %v645_v44  ;;  %5879 = vmatmul.mubr.msk.f32.vlgmr.msra.gmra.mrb[2].mxu1 %vm2202_vm1, %v878_v56 }
 0x1f9   : > { %v5643_v57 = vcombine.low %v1172_v47, %v1179_v24  ;;  %v5645_v2 = vcombine.high %v1172_v47, %v1179_v24  ;;  %v5647_v3 = vcombine.low %v1188_v48, %v1195_v49  ;;  %v5649_v12 = vcombine.high %v1188_v48, %v1195_v49  ;;  %5883 = vmatprep.mubr.msk.f32.mxu1 %vm6473_vm0, %v6471_v0 }
 0x1fa   : > { %v686_v13 = vrot.slane %v678_v55, %v6817_v34  ;;  %v693_v14 = vrot.slane %v679_v25, %v6817_v34  ;;  %v702_v31 = vrot.slane %v694_v16, %v6817_v34  ;;  %v709_v32 = vrot.slane %v695_v21, %v6817_v34 }
 0x1fb   : > { %v6947_v8 = vrot.slane %v5643_v57, %v6812_v27  ;;  %v6950_v22 = vrot.slane %v5645_v2, %v6812_v27  ;;  %v6953_v26 = vrot.slane %v5647_v3, %v6812_v27  ;;  %v6956_v28 = vrot.slane %v5649_v12, %v6812_v27  ;;  %v1048_v29 = vpop.permute.xlu1 %1047  ;;  %v1045_v30 = vpop.permute.xlu0 %1044 }
 0x1fc   : > { %v5634_v33 = vcombine.low %v686_v13, %v693_v14  ;;  %v5636_v35 = vcombine.high %v686_v13, %v693_v14  ;;  %v862_v36 = vcombine.low %v6908_v17, %v6911_v18  ;;  %v863_v37 = vcombine.high %v6908_v17, %v6911_v18 }
 0x1fd   : > { %v1420_v38 = vcombine.low %v6947_v8, %v6950_v22  ;;  %v1421_v39 = vcombine.high %v6947_v8, %v6950_v22  ;;  %v5638_v46 = vcombine.low %v702_v31, %v709_v32  ;;  %v5640_v47 = vcombine.high %v702_v31, %v709_v32 }
 0x1fe   : > { %v6971_v44 = vrot.slane %v5634_v33, %v6812_v27  ;;  %v6974_v45 = vrot.slane %v5636_v35, %v6812_v27  ;;  %v1452_v24 = vcombine.low %v6953_v26, %v6956_v28  ;;  %v1469_v48 = vcombine.high %v6890_v4, %v6893_v5 }
 0x1ff   : > { %v1419_v49 = vrot.slane %v1405_v58, %v6817_v34  ;;  %v1451_v54 = vrot.slane %v1437_v63, %v6817_v34  ;;  %v1054_v55 = vpop.permute.xlu1 %1053  ;;  %v1051_v25 = vpop.permute.xlu0 %1050  ;;  %v1453_v56 = vcombine.high %v6953_v26, %v6956_v28  ;;  %v6991_v57 = vrot.slane %v5638_v46, %v6812_v27 }
 0x200   : > { %v6994_v4 = vrot.slane %v5640_v47, %v6812_v27  ;;  %v879_v40 = vcombine.high %v6902_v10, %v6905_v11  ;;  %v950_v41 = vcombine.low %v6971_v44, %v6974_v45  ;;  %v951_v42 = vcombine.high %v6971_v44, %v6974_v45  ;;  %5882 = vmatpush3.xpose.msk.msra.mxu1 %vm2202_vm1, %v1469_v48 }
 0x201   : > { %v829_v43 = vrot.slane %v815_v50, %v6817_v34  ;;  %v861_v58 = vrot.slane %v847_v51, %v6817_v34  ;;  %5886 = vmatprep.subr.mxu1 %v6471_v0  ;;  %v1470_v63 = vcombine.low %v1419_v49, %v1451_v54  ;;  %v1471_v5 = vcombine.high %v1419_v49, %v1451_v54 }
 0x202   : > { %v1220_v10 = vcombine.low %v1048_v29, %v1054_v55  ;;  %v1221_v11 = vcombine.high %v1048_v29, %v1054_v55  ;;  %v982_v2 = vcombine.low %v6991_v57, %v6994_v4  ;;  %v983_v3 = vcombine.high %v6991_v57, %v6994_v4 }
 0x203   : > { %v1204_v12 = vcombine.low %v1045_v30, %v1051_v25  ;;  %v1205_v59 = vcombine.high %v1045_v30, %v1051_v25  ;;  %v1060_v60 = vpop.permute.xlu1 %1059  ;;  %v1057_v50 = vpop.permute.xlu0 %1056  ;;  %5884 = vmatmul.mubr.msk.f32.vlgmr.msra.gmra.mrb[4].mxu1 %vm2202_vm1, %v879_v40  ;;  %v7020_v51 = vrot.slane %v1420_v38, %v6817_v34  ;;  %v7023_v13 = vrot.slane %v1452_v24, %v6817_v34 }
 0x204   : > { %v1228_v61 = vrot.slane %v1220_v10, %v6812_v27  ;;  %v1235_v62 = vrot.slane %v1221_v11, %v6812_v27  ;;  %5887 = vmatpush3.xpose.msk.msra.mxu1 %vm2202_vm1, %v1470_v63  ;;  %5888 = vmatprep.mubr.msk.f32.mxu1 %vm6473_vm0, %v6471_v0  ;;  %v880_v14 = vcombine.low %v829_v43, %v861_v58 }
 0x205   : > { %v1212_v16 = vrot.slane %v1204_v12, %v6812_v27  ;;  %v1219_v21 = vrot.slane %v1205_v59, %v6812_v27  ;;  %5891 = vmatprep.subr.mxu1 %v6471_v0  ;;  %v881_v29 = vcombine.high %v829_v43, %v861_v58  ;;  %v1472_v30 = vcombine.low %v7020_v51, %v7023_v13 }
 0x206   : > { %v7037_v31 = vrot.slane %v830_v20, %v6817_v34  ;;  %v7040_v32 = vrot.slane %v862_v36, %v6817_v34  ;;  %v1473_v48 = vcombine.high %v7020_v51, %v7023_v13  ;;  %v877_v6 = vrot.slane %v863_v37, %v6817_v34 }
 0x207   : > { %v1268_v33 = vcombine.low %v1212_v16, %v1228_v61  ;;  %v1269_v35 = vcombine.high %v1212_v16, %v1228_v61  ;;  %v1284_v38 = vcombine.low %v1219_v21, %v1235_v62  ;;  %v1285_v46 = vcombine.high %v1219_v21, %v1235_v62  ;;  %v1066_v47 = vpop.permute.xlu1 %1065  ;;  %v1063_v24 = vpop.permute.xlu0 %1062  ;;  %5889 = vmatmul.mubr.msk.f32.vlgmr.msra.gmra.mrb[6].mxu1 %vm2202_vm1, %v880_v14 }
 0x208   : > { %v1252_v49 = vcombine.low %v1060_v60, %v1066_v47  ;;  %v1253_v54 = vcombine.high %v1060_v60, %v1066_v47  ;;  %v1236_v55 = vcombine.low %v1057_v50, %v1063_v24  ;;  %5892 = vmatpush3.xpose.msk.msra.mxu1 %vm2202_vm1, %v1471_v5  ;;  %5893 = vmatprep.mubr.msk.f32.mxu1 %vm6473_vm0, %v6471_v0 }
 0x209   : > { %v1276_v20 = vrot.slane %v1268_v33, %v6817_v34  ;;  %v1283_v36 = vrot.slane %v1269_v35, %v6817_v34  ;;  %v1292_v25 = vrot.slane %v1284_v38, %v6817_v34  ;;  %v1299_v40 = vrot.slane %v1285_v46, %v6817_v34  ;;  %5896 = vmatprep.subr.mxu1 %v6471_v0 }
 0x20a   : > { %v1260_v43 = vrot.slane %v1252_v49, %v6812_v27  ;;  %v1267_v58 = vrot.slane %v1253_v54, %v6812_v27  ;;  %v1237_v63 = vcombine.high %v1057_v50, %v1063_v24  ;;  %v882_v59 = vcombine.low %v7037_v31, %v7040_v32 }
 0x20b   : > { %v5650_v10 = vcombine.low %v1276_v20, %v1283_v36  ;;  %v5652_v5 = vcombine.high %v1276_v20, %v1283_v36  ;;  %v5654_v11 = vcombine.low %v1292_v25, %v1299_v40  ;;  %v5656_v12 = vcombine.high %v1292_v25, %v1299_v40  ;;  %5894 = vmatmul.mubr.msk.f32.vlgmr.msra.gmra.mrb[8].mxu1 %vm2202_vm1, %v881_v29  ;;  %v476_v16 = vpop.permute.xlu1 %475 }
 0x20c   : > { %v1244_v60 = vrot.slane %v1236_v55, %v6812_v27  ;;  %v1251_v61 = vrot.slane %v1237_v63, %v6812_v27  ;;  %v7064_v62 = vrot.slane %v1421_v39, %v6817_v34  ;;  %5897 = vmatpush3.xpose.msk.msra.mxu1 %vm2202_vm1, %v1472_v30  ;;  %v883_v13 = vcombine.high %v7037_v31, %v7040_v32 }
 0x20d   : > { %v7067_v50 = vrot.slane %v5650_v10, %v6812_v27  ;;  %v7070_v51 = vrot.slane %v5652_v5, %v6812_v27  ;;  %v7079_v14 = vrot.slane %v1453_v56, %v6817_v34  ;;  %5898 = vmatprep.mubr.msk.f32.mxu1 %vm6473_vm0, %v6471_v0  ;;  %5901 = vmatprep.subr.mxu1 %v6471_v0  ;;  %v473_v56 = vpop.permute.xlu0 %472 }
 0x20e   : > { %v1300_v8 = vcombine.low %v1244_v60, %v1260_v43  ;;  %v1301_v22 = vcombine.high %v1244_v60, %v1260_v43  ;;  %v1316_v39 = vcombine.low %v1251_v61, %v1267_v58  ;;  %v7085_v21 = vrot.slane %v5654_v11, %v6812_v27 }
 0x20f   : > { %v7088_v29 = vrot.slane %v5656_v12, %v6812_v27  ;;  %v1540_v26 = vcombine.low %v7067_v50, %v7070_v51  ;;  %v1541_v28 = vcombine.high %v7067_v50, %v7070_v51  ;;  %5899 = vmatmul.mubr.msk.f32.vlgmr.msra.gmra.mrb[10].mxu1 %vm2202_vm1, %v882_v59  ;;  %v1317_v32 = vcombine.high %v1251_v61, %v1267_v58 }
 0x210   : > { %v1308_v30 = vrot.slane %v1300_v8, %v6817_v34  ;;  %v1315_v31 = vrot.slane %v1301_v22, %v6817_v34  ;;  %v1324_v33 = vrot.slane %v1316_v39, %v6817_v34  ;;  %5902 = vmatpush3.xpose.msk.msra.mxu1 %vm2202_vm1, %v1473_v48  ;;  %5903 = vmatprep.mubr.msk.f32.mxu1 %vm6473_vm0, %v6471_v0 }
 0x211   : > { %v1474_v35 = vcombine.low %v7064_v62, %v7079_v14  ;;  %v662_v38 = vcombine.low %v6936_v52, %v476_v16  ;;  %v663_v46 = vcombine.high %v6936_v52, %v476_v16  ;;  %v1331_v47 = vrot.slane %v1317_v32, %v6817_v34  ;;  %5906 = vmatprep.subr.mxu1 %v6471_v0 }
 0x212   : > { %v5651_v24 = vcombine.low %v1308_v30, %v1315_v31  ;;  %v5653_v49 = vcombine.high %v1308_v30, %v1315_v31  ;;  %v646_v54 = vcombine.low %v6938_v53, %v473_v56  ;;  %v647_v20 = vcombine.high %v6938_v53, %v473_v56 }
 0x213   : > { %v670_v48 = vrot.slane %v662_v38, %v6812_v27  ;;  %v677_v55 = vrot.slane %v663_v46, %v6812_v27  ;;  %v845_v36 = vrot.slane %v831_v7, %v6817_v34  ;;  %v5655_v40 = vcombine.low %v1324_v33, %v1331_v47  ;;  %5904 = vmatmul.mubr.msk.f32.vlgmr.msra.gmra.mrb[12].mxu1 %vm2202_vm1, %v883_v13 }
 0x214   : > { %v7116_v52 = vrot.slane %v5651_v24, %v6812_v27  ;;  %v7119_v25 = vrot.slane %v5653_v49, %v6812_v27  ;;  %v5657_v43 = vcombine.high %v1324_v33, %v1331_v47  ;;  %5907 = vmatpush3.xpose.msk.msra.mxu1 %vm2202_vm1, %v1474_v35  ;;  %v654_v58 = vrot.slane %v646_v54, %v6812_v27 }
 0x215   : > { %v661_v53 = vrot.slane %v647_v20, %v6812_v27  ;;  %5908 = vmatprep.mubr.msk.f32.mxu1 %vm6473_vm0, %v6471_v0  ;;  %v1572_v9 = vcombine.low %v7085_v21, %v7088_v29  ;;  %v1573_v7 = vcombine.high %v7085_v21, %v7088_v29  ;;  %v7136_v63 = vrot.slane %v5655_v40, %v6812_v27 }
 0x216   : > { %v7139_v10 = vrot.slane %v5657_v43, %v6812_v27  ;;  %5911 = vmatprep.subr.mxu1 %v6471_v0  ;;  %v710_v5 = vcombine.low %v654_v58, %v670_v48  ;;  %v711_v11 = vcombine.high %v654_v58, %v670_v48  ;;  %v1556_v17 = vcombine.low %v7116_v52, %v7119_v25 }
 0x217   : > { %v726_v12 = vcombine.low %v661_v53, %v677_v55  ;;  %v727_v59 = vcombine.high %v661_v53, %v677_v55  ;;  %v884_v37 = vcombine.low %v845_v36, %v877_v6  ;;  %v1475_v60 = vcombine.high %v7064_v62, %v7079_v14 }
 0x218   : > { %v1588_v18 = vcombine.low %v7136_v63, %v7139_v10  ;;  %v718_v61 = vrot.slane %v710_v5, %v6817_v34  ;;  %v725_v13 = vrot.slane %v711_v11, %v6817_v34  ;;  %v885_v39 = vcombine.high %v845_v36, %v877_v6 }
 0x219   : > { %v734_v8 = vrot.slane %v726_v12, %v6817_v34  ;;  %v741_v22 = vrot.slane %v727_v59, %v6817_v34  ;;  %5909 = vmatmul.mubr.msk.f32.vlgmr.msra.gmra.mrb[14].mxu1 %vm2202_vm1, %v884_v37  ;;  %v1548_v16 = vrot.slane %v1540_v26, %v6817_v34  ;;  %v1580_v21 = vrot.slane %v1572_v9, %v6817_v34  ;;  %v1614_v12 = vpop.permute.xlu1 %1613  ;;  %v1617_v59 = vpop.permute.xlu0 %1616 }
 0x21a   : > { %v958_v62 = vrot.slane %v950_v41, %v6817_v34  ;;  %v5635_v14 = vcombine.low %v718_v61, %v725_v13  ;;  %v5637_v29 = vcombine.high %v718_v61, %v725_v13  ;;  %5912 = vmatpush3.xpose.msk.msra.mxu1 %vm2202_vm1, %v1475_v60  ;;  %5913 = vmatprep.mubr.msk.f32.mxu1 %vm6473_vm0, %v6471_v0 }
 0x21b   : > { %v5639_v56 = vcombine.low %v734_v8, %v741_v22  ;;  %v5641_v30 = vcombine.high %v734_v8, %v741_v22  ;;  %5921 = vmatprep.subr.mxu1 %v6471_v0  ;;  %v1604_v31 = vcombine.low %v1548_v16, %v1580_v21  ;;  %v1605_v26 = vcombine.high %v1548_v16, %v1580_v21 }
 0x21c   : > { %v990_v32 = vrot.slane %v982_v2, %v6817_v34  ;;  %v901_v41 = vrot.slane %v5635_v14, %v6812_v27  ;;  %v917_v33 = vrot.slane %v5637_v29, %v6812_v27  ;;  %v1555_v46 = vrot.slane %v1541_v28, %v6817_v34 }
 0x21d   : > { %v933_v35 = vrot.slane %v5639_v56, %v6812_v27  ;;  %v949_v38 = vrot.slane %v5641_v30, %v6812_v27  ;;  %5914 = vmatmul.mubr.msk.f32.vlgmr.msra.gmra.mrb[16].mxu1 %vm2202_vm1, %v885_v39  ;;  %5917 = vmatpush3.xpose.msk.msra.mxu0 %vm2202_vm1, %v1604_v31  ;;  %v1557_v2 = vcombine.high %v7116_v52, %v7119_v25  ;;  %v1620_v37 = vpop.permute.xlu1 %1619 }
 0x21e   : > { %v966_v47 = vcombine.low %v901_v41, %v917_v33  ;;  %5922 = vmatpush3.xpose.msk.msra.mxu1 %vm2202_vm1, %v1605_v26  ;;  %v1014_v49 = vcombine.low %v958_v62, %v990_v32  ;;  %5923 = vmatprep.mubr.msk.f32.mxu1 %vm6473_vm0, %v6471_v0  ;;  %v1015_v54 = vcombine.high %v958_v62, %v990_v32 }
 0x21f   : > { %v998_v24 = vcombine.low %v933_v35, %v949_v38  ;;  %5926 = vmatprep.subr.mxu0 %v6471_v0  ;;  %v1587_v48 = vrot.slane %v1573_v7, %v6817_v34  ;;  %v965_v50 = vrot.slane %v951_v42, %v6817_v34  ;;  %5931 = vmatprep.subr.mxu1 %v6471_v0 }
 0x220   : > { %5919 = vmatmul.mubr.msk.f32.vlgmr.msra.gmra.mrb[2].mxu0 %vm2202_vm1, %v1014_v49  ;;  %v997_v51 = vrot.slane %v983_v3, %v6817_v34  ;;  %v1564_v28 = vrot.slane %v1556_v17, %v6817_v34  ;;  %v1596_v55 = vrot.slane %v1588_v18, %v6817_v34  ;;  %v1589_v20 = vcombine.high %v7136_v63, %v7139_v10 }
 0x221   : > { %5924 = vmatmul.mubr.msk.f32.vlgmr.msra.gmra.mrb[18].mxu1 %vm2202_vm1, %v1015_v54  ;;  %v1606_v44 = vcombine.low %v1555_v46, %v1587_v48  ;;  %v1607_v45 = vcombine.high %v1555_v46, %v1587_v48  ;;  %5928 = vmatprep.mubr.msk.f32.mxu0 %vm6473_vm0, %v6471_v0  ;;  %v974_v57 = vrot.slane %v966_v47, %v6817_v34 }
 0x222   : > { %5933 = vmatprep.mubr.msk.f32.mxu1 %vm6473_vm0, %v6471_v0  ;;  %v1006_v4 = vrot.slane %v998_v24, %v6817_v34  ;;  %v967_v42 = vcombine.high %v901_v41, %v917_v33  ;;  %v1608_v3 = vcombine.low %v1564_v28, %v1596_v55  ;;  %v1609_v36 = vcombine.high %v1564_v28, %v1596_v55 }
 0x223   : > { %5927 = vmatpush3.xpose.msk.msra.mxu0 %vm2202_vm1, %v1606_v44  ;;  %5932 = vmatpush3.xpose.msk.msra.mxu1 %vm2202_vm1, %v1607_v45  ;;  %v999_v52 = vcombine.high %v933_v35, %v949_v38  ;;  %v1016_v25 = vcombine.low %v965_v50, %v997_v51  ;;  %v1017_v40 = vcombine.high %v965_v50, %v997_v51 }
 0x224   : > { %5936 = vmatprep.subr.mxu0 %v6471_v0  ;;  %5941 = vmatprep.subr.mxu1 %v6471_v0  ;;  %v1571_v43 = vrot.slane %v1557_v2, %v6817_v34  ;;  %v1603_v58 = vrot.slane %v1589_v20, %v6817_v34  ;;  %v1018_v53 = vcombine.low %v974_v57, %v1006_v4 }
 0x225   : > { %v1019_v6 = vcombine.high %v974_v57, %v1006_v4  ;;  %v981_v9 = vrot.slane %v967_v42, %v6817_v34  ;;  %v1013_v7 = vrot.slane %v999_v52, %v6817_v34  ;;  %v1658_v17 = vcombine.low %v6784_v15, %v1617_v59  ;;  %v1626_v57 = vpop.permute.xlu1 %1625  ;;  %v1623_v4 = vpop.permute.xlu0 %1622 }
 0x226   : > { %5929 = vmatmul.mubr.msk.f32.vlgmr.msra.gmra.mrb[4].mxu0 %vm2202_vm1, %v1016_v25  ;;  %5934 = vmatmul.mubr.msk.f32.vlgmr.msra.gmra.mrb[20].mxu1 %vm2202_vm1, %v1017_v40  ;;  %v1610_v63 = vcombine.low %v1571_v43, %v1603_v58  ;;  %v1611_v10 = vcombine.high %v1571_v43, %v1603_v58  ;;  %v1659_v18 = vcombine.high %v6784_v15, %v1617_v59 }
 0x227   : > { %5937 = vmatpush3.xpose.msk.msra.mxu0 %vm2202_vm1, %v1608_v3  ;;  %5942 = vmatpush3.xpose.msk.msra.mxu1 %vm2202_vm1, %v1609_v36  ;;  %v1020_v5 = vcombine.low %v981_v9, %v1013_v7  ;;  %v1021_v11 = vcombine.high %v981_v9, %v1013_v7  ;;  %v1674_v60 = vcombine.low %v1614_v12, %v1620_v37 }
 0x228   : > { %5938 = vmatprep.mubr.msk.f32.mxu0 %vm6473_vm0, %v6471_v0  ;;  %5943 = vmatprep.mubr.msk.f32.mxu1 %vm6473_vm0, %v6471_v0  ;;  %v1675_v61 = vcombine.high %v1614_v12, %v1620_v37  ;;  %v1666_v13 = vrot.slane %v1658_v17, %v6812_v27  ;;  %v1673_v8 = vrot.slane %v1659_v18, %v6812_v27 }
 0x229   : > { %5946 = vmatprep.subr.mxu0 %v6471_v0  ;;  %5951 = vmatprep.subr.mxu1 %v6471_v0  ;;  %v1682_v22 = vrot.slane %v1674_v60, %v6812_v27  ;;  %v1629_v42 = vpop.permute.xlu1 %1628  ;;  %v1632_v3 = vpop.permute.xlu0 %1631 }
 0x22a   : > { %5939 = vmatmul.mubr.msk.f32.vlgmr.msra.gmra.mrb[6].mxu0 %vm2202_vm1, %v1018_v53  ;;  %5944 = vmatmul.mubr.msk.f32.vlgmr.msra.gmra.mrb[22].mxu1 %vm2202_vm1, %v1019_v6  ;;  %v1689_v39 = vrot.slane %v1675_v61, %v6812_v27  ;;  %v1690_v36 = vcombine.low %v1623_v4, %v1629_v42  ;;  %v1691_v52 = vcombine.high %v1623_v4, %v1629_v42 }
 0x22b   : > { %5947 = vmatpush3.xpose.msk.msra.mxu0 %vm2202_vm1, %v1610_v63  ;;  %5952 = vmatpush3.xpose.msk.msra.mxu1 %vm2202_vm1, %v1611_v10  ;;  %v1722_v16 = vcombine.low %v1666_v13, %v1682_v22  ;;  %v1723_v21 = vcombine.high %v1666_v13, %v1682_v22  ;;  %v1706_v25 = vcombine.low %v1626_v57, %v1632_v3 }
 0x22c   : > { %5948 = vmatprep.mubr.msk.f32.mxu0 %vm6473_vm0, %v6471_v0  ;;  %5953 = vmatprep.mubr.msk.f32.mxu1 %vm6473_vm0, %v6471_v0  ;;  %v1738_v62 = vcombine.low %v1673_v8, %v1689_v39  ;;  %v1739_v14 = vcombine.high %v1673_v8, %v1689_v39  ;;  %v1707_v40 = vcombine.high %v1626_v57, %v1632_v3 }
 0x22d   : > { %5956 = vmatprep.subr.mxu0 %v6471_v0  ;;  %5961 = vmatprep.subr.mxu1 %v6471_v0  ;;  %v1730_v29 = vrot.slane %v1722_v16, %v6817_v34  ;;  %v1737_v56 = vrot.slane %v1723_v21, %v6817_v34  ;;  %v1698_v43 = vrot.slane %v1690_v36, %v6812_v27  ;;  %v1638_v9 = vpop.permute.xlu1 %1637  ;;  %v1635_v7 = vpop.permute.xlu0 %1634 }
 0x22e   : > { %5949 = vmatmul.mubr.msk.f32.vlgmr.msra.gmra.mrb[8].mxu0 %vm2202_vm1, %v1020_v5  ;;  %5954 = vmatmul.mubr.msk.f32.vlgmr.msra.gmra.mrb[24].mxu1 %vm2202_vm1, %v1021_v11  ;;  %v1746_v30 = vrot.slane %v1738_v62, %v6817_v34  ;;  %v1753_v31 = vrot.slane %v1739_v14, %v6817_v34  ;;  %v1705_v58 = vrot.slane %v1691_v52, %v6812_v27 }
 0x22f   : > { %5958 = vmatprep.mubr.msk.f32.mxu0 %vm6473_vm0, %v6471_v0  ;;  %5963 = vmatprep.mubr.msk.f32.mxu1 %vm6473_vm0, %v6471_v0  ;;  %v5658_v26 = vcombine.low %v1730_v29, %v1737_v56  ;;  %v5660_v32 = vcombine.high %v1730_v29, %v1737_v56  ;;  %v1714_v53 = vrot.slane %v1706_v25, %v6812_v27 }
 0x230   : > { %v5662_v41 = vcombine.low %v1746_v30, %v1753_v31  ;;  %v5664_v33 = vcombine.high %v1746_v30, %v1753_v31  ;;  %v1721_v6 = vrot.slane %v1707_v40, %v6812_v27 }
 0x231   : > { %v1938_v35 = vrot.slane %v5658_v26, %v6812_v27  ;;  %v1954_v38 = vrot.slane %v5660_v32, %v6812_v27  ;;  %v1754_v63 = vcombine.low %v1698_v43, %v1714_v53  ;;  %v1755_v10 = vcombine.high %v1698_v43, %v1714_v53  ;;  %v1641_v37 = vpop.permute.xlu1 %1640  ;;  %v1644_v60 = vpop.permute.xlu0 %1643 }
 0x232   : > { %v1970_v46 = vrot.slane %v5662_v41, %v6812_v27  ;;  %v1986_v2 = vrot.slane %v5664_v33, %v6812_v27  ;;  %v1770_v5 = vcombine.low %v1705_v58, %v1721_v6  ;;  %v1771_v11 = vcombine.high %v1705_v58, %v1721_v6 }
 0x233   : > { %v1994_v47 = vcombine.low %v1938_v35, %v1954_v38  ;;  %v1995_v51 = vcombine.high %v1938_v35, %v1954_v38  ;;  %v1762_v12 = vrot.slane %v1754_v63, %v6817_v34  ;;  %v1769_v59 = vrot.slane %v1755_v10, %v6817_v34 }
 0x234   : > { %v2026_v24 = vcombine.low %v1970_v46, %v1986_v2  ;;  %v2027_v28 = vcombine.high %v1970_v46, %v1986_v2  ;;  %v1778_v17 = vrot.slane %v1770_v5, %v6817_v34  ;;  %v1785_v18 = vrot.slane %v1771_v11, %v6817_v34 }
 0x235   : > { %v2002_v49 = vrot.slane %v1994_v47, %v6817_v34  ;;  %v7258_v55 = vrot.slane %v1995_v51, %v6817_v34  ;;  %v5659_v61 = vcombine.low %v1762_v12, %v1769_v59  ;;  %v5661_v13 = vcombine.high %v1762_v12, %v1769_v59 }
 0x236   : > { %v2034_v54 = vrot.slane %v2026_v24, %v6817_v34  ;;  %v7261_v20 = vrot.slane %v2027_v28, %v6817_v34  ;;  %v5663_v8 = vcombine.low %v1778_v17, %v1785_v18  ;;  %v5665_v22 = vcombine.high %v1778_v17, %v1785_v18 }
 0x237   : > { %v1794_v39 = vcombine.low %v1635_v7, %v1641_v37  ;;  %v1795_v16 = vcombine.high %v1635_v7, %v1641_v37  ;;  %v1810_v21 = vcombine.low %v1638_v9, %v1644_v60  ;;  %v1811_v62 = vcombine.high %v1638_v9, %v1644_v60 }
 0x238   : > { %v2058_v48 = vcombine.low %v2002_v49, %v2034_v54  ;;  %v2059_v50 = vcombine.high %v2002_v49, %v2034_v54  ;;  %v2060_v44 = vcombine.low %v7258_v55, %v7261_v20  ;;  %v2061_v45 = vcombine.high %v7258_v55, %v7261_v20 }
 0x239   : > { %v1802_v14 = vrot.slane %v1794_v39, %v6812_v27  ;;  %v1809_v29 = vrot.slane %v1795_v16, %v6812_v27  ;;  %v1818_v56 = vrot.slane %v1810_v21, %v6812_v27  ;;  %v1825_v30 = vrot.slane %v1811_v62, %v6812_v27 }
 0x23a   : > { %5957 = vmatpush3.msra.mxu0 %v2058_v48  ;;  %5962 = vmatpush3.msra.mxu1 %v2059_v50  ;;  %v3422_v54 = vand.u32 127, %v483_v19  ;;  %v1945_v4 = vrot.slane %v5659_v61, %v6812_v27  ;;  %v1961_v42 = vrot.slane %v5661_v13, %v6812_v27  ;;  %v1977_v19 = vrot.slane %v5663_v8, %v6812_v27 }
 0x23b   : > { %5966 = vmatprep.subr.mxu0 %v6471_v0  ;;  %5971 = vmatprep.subr.mxu1 %v6471_v0  ;;  %v1858_v31 = vcombine.low %v1802_v14, %v1818_v56  ;;  %v1859_v26 = vcombine.high %v1802_v14, %v1818_v56  ;;  %v1874_v32 = vcombine.low %v1809_v29, %v1825_v30 }
 0x23c   : > { %v1875_v41 = vcombine.high %v1809_v29, %v1825_v30  ;;  %vm7285_vm2 = vcmp.le.s32.totalorder %v3422_v54, %v6809_v23  ;;  %v1993_v23 = vrot.slane %v5665_v22, %v6812_v27  ;;  %v2010_v58 = vcombine.low %v1945_v4, %v1961_v42 }
 0x23d   : > { %v1866_v33 = vrot.slane %v1858_v31, %v6817_v34  ;;  %v1873_v35 = vrot.slane %v1859_v26, %v6817_v34  ;;  %v1882_v38 = vrot.slane %v1874_v32, %v6817_v34  ;;  %v2011_v6 = vcombine.high %v1945_v4, %v1961_v42 }
 0x23e   : > { %v1889_v46 = vrot.slane %v1875_v41, %v6817_v34  ;;  %v2042_v53 = vcombine.low %v1977_v19, %v1993_v23  ;;  %v2043_v9 = vcombine.high %v1977_v19, %v1993_v23  ;;  %v7304_v10 = vrot.slane %v2010_v58, %v6817_v34 }
 0x23f   : > { %v5666_v2 = vcombine.low %v1866_v33, %v1873_v35  ;;  %v5668_v47 = vcombine.high %v1866_v33, %v1873_v35  ;;  %v7310_v11 = vrot.slane %v2011_v6, %v6817_v34 }
 0x240   : > { %v5670_v24 = vcombine.low %v1882_v38, %v1889_v46  ;;  %v5672_v49 = vcombine.high %v1882_v38, %v1889_v46  ;;  %v7307_v5 = vrot.slane %v2042_v53, %v6817_v34  ;;  %v7313_v17 = vrot.slane %v2043_v9, %v6817_v34 }
 0x241   : > { %v2074_v3 = vrot.slane %v5666_v2, %v6812_v27  ;;  %v2090_v36 = vrot.slane %v5668_v47, %v6812_v27 }
 0x242   : > { %v2106_v52 = vrot.slane %v5670_v24, %v6812_v27  ;;  %v2122_v25 = vrot.slane %v5672_v49, %v6812_v27  ;;  %v2062_v8 = vcombine.low %v7304_v10, %v7307_v5  ;;  %v2063_v22 = vcombine.high %v7304_v10, %v7307_v5 }
 0x243   : > { %v2130_v7 = vcombine.low %v2074_v3, %v2090_v36  ;;  %v2131_v12 = vcombine.high %v2074_v3, %v2090_v36  ;;  %v2064_v21 = vcombine.low %v7310_v11, %v7313_v17  ;;  %v2065_v62 = vcombine.high %v7310_v11, %v7313_v17 }
 0x244   : > { %v2162_v63 = vcombine.low %v2106_v52, %v2122_v25  ;;  %v2163_v60 = vcombine.high %v2106_v52, %v2122_v25 }
 0x245   : > { %v7316_v18 = vrot.slane %v2130_v7, %v6817_v34  ;;  %v7330_v39 = vrot.slane %v2131_v12, %v6817_v34 }
 0x246   : > { %v7319_v37 = vrot.slane %v2162_v63, %v6817_v34  ;;  %v7343_v56 = vrot.slane %v2163_v60, %v6817_v34 }
 0x248   : > { %v2194_v14 = vcombine.low %v7316_v18, %v7319_v37  ;;  %v2195_v29 = vcombine.high %v7316_v18, %v7319_v37  ;;  %v2196_v32 = vcombine.low %v7330_v39, %v7343_v56  ;;  %v2197_v41 = vcombine.high %v7330_v39, %v7343_v56 }
 0x2cb   : > { %v2275_v50 = vpop.f32.mrb[2].mxu1 }
 0x2cc   : > { %v7291_v51 = vsel %vm7285_vm2, %v2275_v50, -1e+30  ;;  %v5880_v28 = vpop.f32.mrb[3].mxu1 }
 0x2cd   : > { %v3440_v57 = vsel %vm2202_vm1, %v7291_v51, -inf }
 0x2ce   : > { %3441 = vmax.xlane.f32.xlu0 %v3440_v57 }
 0x2d6   : > { %v2351_v40 = vpop.f32.mrb[4].mxu1 }
 0x2d7   : > { %v5885_v43 = vpop.f32.mrb[5].mxu1 }
 0x2d8   : > { %v7379_v43 = vsel %vm7285_vm2, %v2351_v40, -1e+30 }
 0x2d9   : > { %v3443_v9 = vsel %vm2202_vm1, %v7379_v43, -inf }
 0x2da   : > { %v2427_v59 = vpop.f32.mrb[6].mxu1 }
 0x2db   : > { %v7323_v61 = vsel %vm7285_vm2, %v2427_v59, -1e+30  ;;  %v5890_v13 = vpop.f32.mrb[7].mxu1 }
 0x2dc   : > { %v3446_v16 = vsel %vm2202_vm1, %v7323_v61, -inf }
 0x2dd   : > { %3447 = vmax.xlane.f32.xlu0 %v3446_v16 }
 0x2de   : > { %v2503_v30 = vpop.f32.mrb[8].mxu1 }
 0x2df   : > { %v7347_v31 = vsel %vm7285_vm2, %v2503_v30, -1e+30  ;;  %v5895_v26 = vpop.f32.mrb[9].mxu1 }
 0x2e0   : > { %v3449_v33 = vsel %vm2202_vm1, %v7347_v31, -inf }
 0x2e1   : > { %3450 = vmax.xlane.f32.xlu0 %v3449_v33 }
 0x2e2   : > { %v2579_v35 = vpop.f32.mrb[10].mxu1 }
 0x2e3   : > { %v5900_v38 = vpop.f32.mrb[11].mxu1 }
 0x2e6   : > { %v2655_v46 = vpop.f32.mrb[12].mxu1 }
 0x2e7   : > { %v7357_v2 = vsel %vm7285_vm2, %v2655_v46, -1e+30  ;;  %v5905_v47 = vpop.f32.mrb[13].mxu1 }
 0x2e8   : > { %v3455_v24 = vsel %vm2202_vm1, %v7357_v2, -inf }
 0x2e9   : > { %3456 = vmax.xlane.f32.xlu0 %v3455_v24 }
 0x2ec   : > { %v2731_v49 = vpop.f32.mrb[14].mxu1 }
 0x2ed   : > { %v5910_v54 = vpop.f32.mrb[15].mxu1 }
 0x2f0   : > { %v2807_v50 = vpop.f32.mrb[16].mxu1 }
 0x2f1   : > { %v7363_v28 = vsel %vm7285_vm2, %v2807_v50, -1e+30  ;;  %v5915_v57 = vpop.f32.mrb[17].mxu1 }
 0x2f2   : > { %v3461_v4 = vsel %vm2202_vm1, %v7363_v28, -inf }
 0x2f3   : > { %3462 = vmax.xlane.f32.xlu0 %v3461_v4  ;;  %v2883_v42 = vpop.f32.mrb[2].mxu0 }
 0x2f4   : > { %v7369_v19 = vsel %vm7285_vm2, %v2883_v42, -1e+30  ;;  %v2959_v23 = vpop.f32.mrb[18].mxu1  ;;  %v5920_v3 = vpop.f32.mrb[3].mxu0 }
 0x2f5   : > { %v7373_v36 = vsel %vm7285_vm2, %v2959_v23, -1e+30  ;;  %v5925_v52 = vpop.f32.mrb[19].mxu1  ;;  %v3464_v25 = vsel %vm2202_vm1, %v7369_v19, -inf }
 0x2f6   : > { %v3467_v58 = vsel %vm2202_vm1, %v7373_v36, -inf  ;;  %3465 = vmax.xlane.f32.xlu1 %v3464_v25  ;;  %v7420_v52 = vsel %vm7285_vm2, %v2579_v35, -1e+30 }
 0x2f7   : > { %3468 = vmax.xlane.f32.xlu0 %v3467_v58  ;;  %v3452_v25 = vsel %vm2202_vm1, %v7420_v52, -inf  ;;  %v7426_v58 = vsel %vm7285_vm2, %v2731_v49, -1e+30 }
 0x2f9   : > { %v3035_v53 = vpop.f32.mrb[4].mxu0  ;;  %v3111_v6 = vpop.f32.mrb[20].mxu1 }
 0x2fa   : > { %v7387_v7 = vsel %vm7285_vm2, %v3035_v53, -1e+30  ;;  %v7391_v63 = vsel %vm7285_vm2, %v3111_v6, -1e+30  ;;  %v5930_v40 = vpop.f32.mrb[5].mxu0  ;;  %v5935_v12 = vpop.f32.mrb[21].mxu1  ;;  %3444 = vmax.xlane.f32.xlu1 %v3443_v9 }
 0x2fb   : > { %v3473_v59 = vsel %vm2202_vm1, %v7391_v63, -inf  ;;  %v3470_v16 = vsel %vm2202_vm1, %v7387_v7, -inf  ;;  %v3458_v53 = vsel %vm2202_vm1, %v7426_v58, -inf }
 0x2fc   : > { %3474 = vmax.xlane.f32.xlu0 %v3473_v59 }
 0x2fd   : > { %v3187_v60 = vpop.f32.mrb[6].mxu0  ;;  %v3263_v13 = vpop.f32.mrb[22].mxu1 }
 0x2fe   : > { %v3436_v30 = vsel %vm7285_vm2, %v3187_v60, -1e+30  ;;  %v7401_v26 = vsel %vm7285_vm2, %v3263_v13, -1e+30  ;;  %v5940_v33 = vpop.f32.mrb[7].mxu0  ;;  %v5945_v38 = vpop.f32.mrb[23].mxu1  ;;  %3471 = vmax.xlane.f32.xlu1 %v3470_v16 }
 0x2ff   : > { %v3479_v46 = vsel %vm2202_vm1, %v7401_v26, -inf  ;;  %v3476_v54 = vsel %vm2202_vm1, %v3436_v30, -inf }
 0x300   : > { %3480 = vmax.xlane.f32.xlu0 %v3479_v46 }
 0x301   : > { %v3339_v47 = vpop.f32.mrb[8].mxu0  ;;  %v3415_v24 = vpop.f32.mrb[24].mxu1 }
 0x302   : > { %v7408_v50 = vsel %vm7285_vm2, %v3339_v47, -1e+30  ;;  %v7412_v57 = vsel %vm7285_vm2, %v3415_v24, -1e+30  ;;  %v5950_v4 = vpop.f32.mrb[9].mxu0  ;;  %v5955_v42 = vpop.f32.mrb[25].mxu1  ;;  %3477 = vmax.xlane.f32.xlu1 %v3476_v54 }
 0x303   : > { %v3485_v23 = vsel %vm2202_vm1, %v7412_v57, -inf  ;;  %v3482_v3 = vsel %vm2202_vm1, %v7408_v50, -inf }
 0x304   : > { %3486 = vmax.xlane.f32.xlu0 %v3485_v23 }
 0x306   : > { %3483 = vmax.xlane.f32.xlu1 %v3482_v3 }
 0x30a   : > { %3453 = vmax.xlane.f32.xlu1 %v3452_v25 }
 0x30e   : > { %3459 = vmax.xlane.f32.xlu1 %v3458_v53 }
 0x31a   : > { %1646 = vrot.lane.b32.xlu0 %v6784_v15, %s6486_s29 }
 0x31f   : > { %1649 = vrot.lane.b32.xlu1 %v6784_v15, %s6485_s27 }
 0x35b   : > { %v3442_v35 = vpop.xlane.xlu0 %3441 }
 0x35c   : > { %v3488_v6 = vsub.f32 %v7291_v51, %v3442_v35 }
 0x35e   : > { %v3504_v9 = vmul.f32 1.442695, %v3488_v6 }
 0x360   : > { %6242 = vpow2.f32 %v3504_v9 }
 0x36a   : > { %v7435_v40 = vpop.eup %6242  ;;  %v3448_v49 = vpop.xlane.xlu0 %3447 }
 0x36b   : > { %v3536_v48 = vsel %vm2202_vm1, %v7435_v40, 0.0  ;;  %v3490_v60 = vsub.f32 %v7323_v61, %v3448_v49 }
 0x36c   : > { %3537 = vadd.xlane.f32.xlu1 %v3536_v48 }
 0x36d   : > { %v3508_v38 = vmul.f32 1.442695, %v3490_v60 }
 0x36e   : > { %v3451_v12 = vpop.xlane.xlu0 %3450 }
 0x36f   : > { %v3491_v54 = vsub.f32 %v7347_v31, %v3451_v12 }
 0x371   : > { %v3510_v61 = vmul.f32 1.442695, %v3491_v54 }
 0x376   : > { %v3457_v59 = vpop.xlane.xlu0 %3456 }
 0x380   : > { %v3463_v13 = vpop.xlane.xlu0 %3462 }
 0x381   : > { %v3495_v60 = vsub.f32 %v7363_v28, %v3463_v13 }
 0x383   : > { %v3466_v16 = vpop.xlane.xlu1 %3465 }
 0x384   : > { %v3496_v33 = vsub.f32 %v7369_v19, %v3466_v16  ;;  %v3469_v24 = vpop.xlane.xlu0 %3468 }
 0x386   : > { %v3520_v46 = vmul.f32 1.442695, %v3496_v33 }
 0x387   : > { %v3445_v51 = vpop.xlane.xlu1 %3444 }
 0x388   : > { %6244 = vpow2.f32 %v3520_v46  ;;  %v3489_v47 = vsub.f32 %v7379_v43, %v3445_v51  ;;  %v3493_v43 = vsub.f32 %v7357_v2, %v3457_v59  ;;  %v3518_v51 = vmul.f32 1.442695, %v3495_v60 }
 0x389   : > { %6246 = vpow2.f32 %v3508_v38  ;;  %v3475_v25 = vpop.xlane.xlu0 %3474 }
 0x38a   : > { %v3506_v4 = vmul.f32 1.442695, %v3489_v47  ;;  %v3499_v28 = vsub.f32 %v7391_v63, %v3475_v25 }
 0x38b   : > { %v3472_v42 = vpop.xlane.xlu1 %3471 }
 0x38c   : > { %6248 = vpow2.f32 %v3506_v4  ;;  %v3498_v23 = vsub.f32 %v7387_v7, %v3472_v42 }
 0x38d   : > { %v3481_v49 = vpop.xlane.xlu0 %3480 }
 0x38e   : > { %v3524_v3 = vmul.f32 1.442695, %v3498_v23 }
 0x38f   : > { %v3478_v53 = vpop.xlane.xlu1 %3477 }
 0x390   : > { %6250 = vpow2.f32 %v3524_v3  ;;  %v3500_v19 = vsub.f32 %v3436_v30, %v3478_v53  ;;  %v3514_v30 = vmul.f32 1.442695, %v3493_v43 }
 0x391   : > { %6252 = vpow2.f32 %v3510_v61  ;;  %v3487_v47 = vpop.xlane.xlu0 %3486  ;;  %v3526_v61 = vmul.f32 1.442695, %v3499_v28 }
 0x392   : > { %v7444_v35 = vpop.eup %6244  ;;  %v3528_v6 = vmul.f32 1.442695, %v3500_v19  ;;  %v3503_v63 = vsub.f32 %v7412_v57, %v3487_v47 }
 0x393   : > { %v3484_v9 = vpop.xlane.xlu1 %3483  ;;  %v3560_v31 = vsel %vm2202_vm1, %v7444_v35, 0.0  ;;  %v7449_v48 = vpop.eup %6246 }
 0x394   : > { %6254 = vpow2.f32 %v3528_v6  ;;  %v3502_v7 = vsub.f32 %v7408_v50, %v3484_v9  ;;  %3561 = vadd.xlane.f32.xlu1 %v3560_v31  ;;  %v3542_v59 = vsel %vm2202_vm1, %v7449_v48, 0.0  ;;  %v3497_v50 = vsub.f32 %v7373_v36, %v3469_v24 }
 0x395   : > { %v3501_v36 = vsub.f32 %v7401_v26, %v3481_v49  ;;  %v3534_v26 = vmul.f32 1.442695, %v3503_v63 }
 0x396   : > { %v7452_v12 = vpop.eup %6248  ;;  %v3532_v16 = vmul.f32 1.442695, %v3502_v7  ;;  %v3522_v23 = vmul.f32 1.442695, %v3497_v50 }
 0x397   : > { %v3454_v33 = vpop.xlane.xlu1 %3453  ;;  %v3539_v2 = vsel %vm2202_vm1, %v7452_v12, 0.0 }
 0x398   : > { %6256 = vpow2.f32 %v3532_v16  ;;  %v3492_v38 = vsub.f32 %v7420_v52, %v3454_v33  ;;  %3540 = vadd.xlane.f32.xlu0 %v3539_v2  ;;  %3543 = vadd.xlane.f32.xlu1 %v3542_v59 }
 0x399   : > { %6258 = vpow2.f32 %v3514_v30 }
 0x39a   : > { %v7461_v46 = vpop.eup %6250  ;;  %v3512_v13 = vmul.f32 1.442695, %v3492_v38 }
 0x39b   : > { %v3460_v54 = vpop.xlane.xlu1 %3459  ;;  %v3566_v4 = vsel %vm2202_vm1, %v7461_v46, 0.0  ;;  %v7466_v42 = vpop.eup %6252 }
 0x39c   : > { %6260 = vpow2.f32 %v3512_v13  ;;  %v3494_v52 = vsub.f32 %v7426_v58, %v3460_v54  ;;  %3567 = vadd.xlane.f32.xlu0 %v3566_v4  ;;  %v3545_v53 = vsel %vm2202_vm1, %v7466_v42, 0.0  ;;  %v3530_v58 = vmul.f32 1.442695, %v3501_v36 }
 0x39d   : > { %6262 = vpow2.f32 %v3518_v51 }
 0x39e   : > { %v7470_v24 = vpop.eup %6254  ;;  %v3516_v3 = vmul.f32 1.442695, %v3494_v52  ;;  %v7527_v52 = vpop.permute.xlu0 %1646 }
 0x39f   : > { %v3572_v25 = vsel %vm2202_vm1, %v7470_v24, 0.0  ;;  %v7517_v13 = vpop.permute.xlu1 %1649 }
 0x3a0   : > { %6264 = vpow2.f32 %v3516_v3  ;;  %3573 = vadd.xlane.f32.xlu1 %v3572_v25  ;;  %3546 = vadd.xlane.f32.xlu0 %v3545_v53 }
 0x3a1   : > { %6266 = vpow2.f32 %v3522_v23 }
 0x3a2   : > { %v7477_v19 = vpop.eup %6256  ;;  %6268 = vpow2.f32 %v3526_v61 }
 0x3a3   : > { %v3578_v43 = vsel %vm2202_vm1, %v7477_v19, 0.0  ;;  %v7481_v57 = vpop.eup %6258  ;;  %6270 = vpow2.f32 %v3530_v58 }
 0x3a4   : > { %3579 = vadd.xlane.f32.xlu0 %v3578_v43  ;;  %6272 = vpow2.f32 %v3534_v26  ;;  %v3551_v31 = vsel %vm2202_vm1, %v7481_v57, 0.0 }
 0x3a6   : > { %v7483_v6 = vpop.eup %6260 }
 0x3a7   : > { %v3548_v9 = vsel %vm2202_vm1, %v7483_v6, 0.0  ;;  %v7489_v7 = vpop.eup %6262 }
 0x3a8   : > { %3549 = vadd.xlane.f32.xlu1 %v3548_v9  ;;  %3552 = vadd.xlane.f32.xlu0 %v3551_v31  ;;  %v3557_v16 = vsel %vm2202_vm1, %v7489_v7, 0.0 }
 0x3aa   : > { %v7491_v49 = vpop.eup %6264 }
 0x3ab   : > { %v7493_v30 = vpop.eup %6266  ;;  %v3554_v60 = vsel %vm2202_vm1, %v7491_v49, 0.0 }
 0x3ac   : > { %v7499_v33 = vpop.eup %6268  ;;  %3555 = vadd.xlane.f32.xlu0 %v3554_v60  ;;  %3558 = vadd.xlane.f32.xlu1 %v3557_v16  ;;  %v3563_v59 = vsel %vm2202_vm1, %v7493_v30, 0.0 }
 0x3ad   : > { %v7501_v2 = vpop.eup %6270  ;;  %v3569_v38 = vsel %vm2202_vm1, %v7499_v33, 0.0 }
 0x3ae   : > { %v7507_v50 = vpop.eup %6272  ;;  %v3575_v51 = vsel %vm2202_vm1, %v7501_v2, 0.0 }
 0x3af   : > { %v3581_v28 = vsel %vm2202_vm1, %v7507_v50, 0.0 }
 0x3b0   : > { %3564 = vadd.xlane.f32.xlu0 %v3563_v59  ;;  %3570 = vadd.xlane.f32.xlu1 %v3569_v38 }
 0x3b4   : > { %3576 = vadd.xlane.f32.xlu0 %v3575_v51  ;;  %3582 = vadd.xlane.f32.xlu1 %v3581_v28 }
 0x3c5   : > { %1652 = vrot.lane.b32.xlu1 %v6784_v15, %s6488_s10 }
 0x3ca   : > { %1655 = vrot.lane.b32.xlu0 %v6784_v15, %s6487_s9 }
 0x3f9   : > { %v3538_v47 = vpop.xlane.xlu1 %3537 }
 0x3fa   : > { %6274 = vrcp.f32 %v3538_v47 }
 0x404   : > { %v6275_v54 = vpop.eup %6274 }
 0x405   : > { %v3600_v4 = vmul.f32 %v6275_v54, %v7435_v40 }
 0x407   : > { %5959 = vmatmul.mubr.msk.f32.vlgmr.msra.gmra.mrb[10].mxu0 %vm2202_vm1, %v3600_v4 }
 0x408   : > { %5967 = vmatpush3.msra.mxu0 %v2060_v44  ;;  %5968 = vmatprep.mubr.msk.f32.mxu0 %vm6473_vm0, %v6471_v0 }
 0x409   : > { %5976 = vmatprep.subr.mxu0 %v6471_v0 }
 0x421   : > { %v3562_v15 = vpop.xlane.xlu1 %3561 }
 0x425   : > { %v3544_v23 = vpop.xlane.xlu1 %3543  ;;  %v3541_v36 = vpop.xlane.xlu0 %3540 }
 0x426   : > { %6276 = vrcp.f32 %v3544_v23 }
 0x427   : > { %6278 = vrcp.f32 %v3541_v36 }
 0x429   : > { %v3568_v61 = vpop.xlane.xlu0 %3567 }
 0x42d   : > { %v3547_v40 = vpop.xlane.xlu0 %3546  ;;  %v7530_v44 = vpop.xlane.xlu1 %3573 }
 0x42e   : > { %6280 = vrcp.f32 %v3547_v40 }
 0x430   : > { %v6277_v63 = vpop.eup %6276 }
 0x431   : > { %v6279_v3 = vpop.eup %6278  ;;  %v3602_v25 = vmul.f32 %v6277_v63, %v7449_v48  ;;  %v7532_v53 = vpop.xlane.xlu0 %3579 }
 0x432   : > { %v3601_v58 = vmul.f32 %v6279_v3, %v7452_v12 }
 0x433   : > { %5969 = vmatmul.mubr.msk.f32.vlgmr.msra.gmra.mrb[12].mxu0 %vm2202_vm1, %v3602_v25 }
 0x434   : > { %5964 = vmatmul.mubr.msk.f32.vlgmr.msra.gmra.mrb[26].mxu1 %vm2202_vm1, %v3601_v58  ;;  %5977 = vmatpush3.msra.mxu0 %v2062_v8 }
 0x435   : > { %5972 = vmatpush3.msra.mxu1 %v2061_v45  ;;  %v3550_v26 = vpop.xlane.xlu1 %3549  ;;  %v3553_v48 = vpop.xlane.xlu0 %3552  ;;  %5973 = vmatprep.mubr.msk.f32.mxu1 %vm6473_vm0, %v6471_v0 }
 0x436   : > { %6282 = vrcp.f32 %v3550_v26  ;;  %5981 = vmatprep.subr.mxu1 %v6471_v0  ;;  %5978 = vmatprep.mubr.msk.f32.mxu0 %vm6473_vm0, %v6471_v0 }
 0x437   : > { %6284 = vrcp.f32 %v3553_v48  ;;  %5986 = vmatprep.subr.mxu0 %v6471_v0 }
 0x438   : > { %v6281_v12 = vpop.eup %6280 }
 0x439   : > { %v3559_v8 = vpop.xlane.xlu1 %3558  ;;  %v3556_v43 = vpop.xlane.xlu0 %3555  ;;  %v3603_v55 = vmul.f32 %v6281_v12, %v7466_v42 }
 0x43a   : > { %6286 = vrcp.f32 %v3559_v8 }
 0x43b   : > { %6288 = vrcp.f32 %v3556_v43  ;;  %5974 = vmatmul.mubr.msk.f32.vlgmr.msra.gmra.mrb[28].mxu1 %vm2202_vm1, %v3603_v55 }
 0x43c   : > { %6290 = vrcp.f32 %v3562_v15  ;;  %5982 = vmatpush3.msra.mxu1 %v2063_v22  ;;  %5983 = vmatprep.mubr.msk.f32.mxu1 %vm6473_vm0, %v6471_v0 }
 0x43d   : > { %v3571_v20 = vpop.xlane.xlu1 %3570  ;;  %v3565_v45 = vpop.xlane.xlu0 %3564  ;;  %5991 = vmatprep.subr.mxu1 %v6471_v0 }
 0x43e   : > { %6292 = vrcp.f32 %v3565_v45 }
 0x43f   : > { %6294 = vrcp.f32 %v3568_v61 }
 0x440   : > { %v6283_v9 = vpop.eup %6282  ;;  %6296 = vrcp.f32 %v3571_v20 }
 0x441   : > { %v6285_v42 = vpop.eup %6284  ;;  %v3604_v31 = vmul.f32 %v6283_v9, %v7483_v6  ;;  %v3583_v60 = vpop.xlane.xlu1 %3582  ;;  %6298 = vrcp.f32 %v7530_v44 }
 0x442   : > { %v3577_v16 = vpop.xlane.xlu0 %3576  ;;  %v3605_v59 = vmul.f32 %v6285_v42, %v7481_v57 }
 0x443   : > { %5979 = vmatmul.mubr.msk.f32.vlgmr.msra.gmra.mrb[14].mxu0 %vm2202_vm1, %v3604_v31  ;;  %6300 = vrcp.f32 %v3577_v16 }
 0x444   : > { %v6287_v10 = vpop.eup %6286  ;;  %5984 = vmatmul.mubr.msk.f32.vlgmr.msra.gmra.mrb[30].mxu1 %vm2202_vm1, %v3605_v59  ;;  %5987 = vmatpush3.msra.mxu0 %v2064_v21  ;;  %6302 = vrcp.f32 %v7532_v53 }
 0x445   : > { %v6289_v5 = vpop.eup %6288  ;;  %v3607_v22 = vmul.f32 %v6287_v10, %v7489_v7  ;;  %5992 = vmatpush3.msra.mxu1 %v2065_v62  ;;  %v1653_v6 = vpop.permute.xlu1 %1652  ;;  %5988 = vmatprep.mubr.msk.f32.mxu0 %vm6473_vm0, %v6471_v0  ;;  %6304 = vrcp.f32 %v3583_v60 }
 0x446   : > { %v1656_v38 = vpop.permute.xlu0 %1655  ;;  %v6291_v57 = vpop.eup %6290  ;;  %v3606_v51 = vmul.f32 %v6289_v5, %v7491_v49  ;;  %v1826_v28 = vcombine.low %v7527_v52, %v1653_v6  ;;  %v1827_v47 = vcombine.high %v7527_v52, %v1653_v6  ;;  %5993 = vmatprep.mubr.msk.f32.mxu1 %vm6473_vm0, %v6471_v0  ;;  %5996 = vmatprep.subr.mxu0 %v6471_v0 }
 0x447   : > { %v1842_v21 = vcombine.low %v7517_v13, %v1656_v38  ;;  %v1843_v11 = vcombine.high %v7517_v13, %v1656_v38  ;;  %6001 = vmatprep.subr.mxu1 %v6471_v0  ;;  %v3608_v54 = vmul.f32 %v6291_v57, %v7444_v35 }
 0x448   : > { %v1834_v17 = vrot.slane %v1826_v28, %v6812_v27  ;;  %v1841_v62 = vrot.slane %v1827_v47, %v6812_v27  ;;  %5989 = vmatmul.mubr.msk.f32.vlgmr.msra.gmra.mrb[16].mxu0 %vm2202_vm1, %v3606_v51  ;;  %5994 = vmatmul.mubr.msk.f32.vlgmr.msra.gmra.mrb[32].mxu1 %vm2202_vm1, %v3607_v22  ;;  %v6293_v49 = vpop.eup %6292 }
 0x449   : > { %v1850_v7 = vrot.slane %v1842_v21, %v6812_v27  ;;  %v1857_v4 = vrot.slane %v1843_v11, %v6812_v27  ;;  %5997 = vmatpush3.msra.mxu0 %v2194_v14  ;;  %6002 = vmatpush3.msra.mxu1 %v2195_v29  ;;  %v6295_v13 = vpop.eup %6294  ;;  %v3609_v52 = vmul.f32 %v6293_v49, %v7493_v30 }
 0x44a   : > { %5998 = vmatprep.mubr.msk.f32.mxu0 %vm6473_vm0, %v6471_v0  ;;  %6003 = vmatprep.mubr.msk.f32.mxu1 %vm6473_vm0, %v6471_v0  ;;  %v6297_v35 = vpop.eup %6296  ;;  %v3610_v29 = vmul.f32 %v6295_v13, %v7461_v46 }
 0x44b   : > { %v1890_v15 = vcombine.low %v1834_v17, %v1850_v7  ;;  %v1891_v23 = vcombine.high %v1834_v17, %v1850_v7  ;;  %v1906_v14 = vcombine.low %v1841_v62, %v1857_v4  ;;  %v1907_v36 = vcombine.high %v1841_v62, %v1857_v4  ;;  %6006 = vmatprep.subr.mxu0 %v6471_v0  ;;  %v6299_v26 = vpop.eup %6298 }
 0x44c   : > { %6011 = vmatprep.subr.mxu1 %v6471_v0  ;;  %5999 = vmatmul.mubr.msk.f32.vlgmr.msra.gmra.mrb[18].mxu0 %vm2202_vm1, %v3608_v54  ;;  %v3611_v40 = vmul.f32 %v6297_v35, %v7499_v33  ;;  %v3612_v42 = vmul.f32 %v6299_v26, %v7470_v24 }
 0x44d   : > { %v1898_v18 = vrot.slane %v1890_v15, %v6817_v34  ;;  %v1905_v37 = vrot.slane %v1891_v23, %v6817_v34  ;;  %6004 = vmatmul.mubr.msk.f32.vlgmr.msra.gmra.mrb[34].mxu1 %vm2202_vm1, %v3609_v52  ;;  %v1914_v30 = vrot.slane %v1906_v14, %v6817_v34  ;;  %v1921_v61 = vrot.slane %v1907_v36, %v6817_v34  ;;  %v6301_v12 = vpop.eup %6300 }
 0x44e   : > { %6007 = vmatpush3.msra.mxu0 %v2196_v32  ;;  %6012 = vmatpush3.msra.mxu1 %v2197_v41  ;;  %v6303_v9 = vpop.eup %6302  ;;  %v3613_v31 = vmul.f32 %v6301_v12, %v7501_v2 }
 0x44f   : > { %v5667_v63 = vcombine.low %v1898_v18, %v1905_v37  ;;  %v5669_v3 = vcombine.high %v1898_v18, %v1905_v37  ;;  %6008 = vmatprep.mubr.msk.f32.mxu0 %vm6473_vm0, %v6471_v0  ;;  %6013 = vmatprep.mubr.msk.f32.mxu1 %vm6473_vm0, %v6471_v0  ;;  %v5671_v46 = vcombine.low %v1914_v30, %v1921_v61  ;;  %v6305_v60 = vpop.eup %6304 }
 0x450   : > { %v5673_v25 = vcombine.high %v1914_v30, %v1921_v61  ;;  %6016 = vmatprep.subr.mxu0 %v6471_v0  ;;  %6021 = vmatprep.subr.mxu1 %v6471_v0  ;;  %v3614_v10 = vmul.f32 %v6303_v9, %v7477_v19  ;;  %v3615_v5 = vmul.f32 %v6305_v60, %v7507_v50 }
 0x451   : > { %v2081_v39 = vrot.slane %v5667_v63, %v6812_v27  ;;  %v2097_v56 = vrot.slane %v5669_v3, %v6812_v27  ;;  %6009 = vmatmul.mubr.msk.f32.vlgmr.msra.gmra.mrb[20].mxu0 %vm2202_vm1, %v3610_v29  ;;  %6014 = vmatmul.mubr.msk.f32.vlgmr.msra.gmra.mrb[36].mxu1 %vm2202_vm1, %v3611_v40  ;;  %v2113_v32 = vrot.slane %v5671_v46, %v6812_v27 }
 0x452   : > { %v2129_v41 = vrot.slane %v5673_v25, %v6812_v27  ;;  %6018 = vmatprep.mubr.msk.f32.mxu0 %vm6473_vm0, %v6471_v0  ;;  %6023 = vmatprep.mubr.msk.f32.mxu1 %vm6473_vm0, %v6471_v0  ;;  %v5417_v25 = vld [vmem:[#allocation7] sm:$0xff] }
 0x453   : > { %v2146_v33 = vcombine.low %v2081_v39, %v2097_v56  ;;  %v2147_v44 = vcombine.high %v2081_v39, %v2097_v56  ;;  %v5418_v39 = vld [vmem:[#allocation7 + $0x8] sm:$0xff] }
 0x454   : > { %v2178_v53 = vcombine.low %v2113_v32, %v2129_v41  ;;  %v2179_v58 = vcombine.high %v2113_v32, %v2129_v41  ;;  %v6128_v41 = vpack.c.bf16 %v5418_v39, %v5417_v25 }
 0x455   : > { %v2154_v48 = vrot.slane %v2146_v33, %v6817_v34  ;;  %v2161_v43 = vrot.slane %v2147_v44, %v6817_v34 }
 0x456   : > { %v2186_v8 = vrot.slane %v2178_v53, %v6817_v34  ;;  %v2193_v55 = vrot.slane %v2179_v58, %v6817_v34 }
 0x458   : > { %v2198_v20 = vcombine.low %v2154_v48, %v2186_v8  ;;  %v2199_v45 = vcombine.high %v2154_v48, %v2186_v8  ;;  %v2200_v16 = vcombine.low %v2161_v43, %v2193_v55  ;;  %v2201_v59 = vcombine.high %v2161_v43, %v2193_v55 }
 0x45a   : > { %6017 = vmatpush3.msra.mxu0 %v2198_v20  ;;  %6022 = vmatpush3.msra.mxu1 %v2199_v45 }
 0x45b   : > { %6019 = vmatmul.mubr.msk.f32.vlgmr.msra.gmra.mrb[22].mxu0 %vm2202_vm1, %v3612_v42  ;;  %6024 = vmatmul.mubr.msk.f32.vlgmr.msra.gmra.mrb[38].mxu1 %vm2202_vm1, %v3613_v31 }
 0x45c   : > { %6026 = vmatprep.subr.mxu0 %v6471_v0  ;;  %6031 = vmatprep.subr.mxu1 %v6471_v0 }
 0x45d   : > { %6027 = vmatpush3.msra.mxu0 %v2200_v16  ;;  %6032 = vmatpush3.msra.mxu1 %v2201_v59 }
 0x45e   : > { %6028 = vmatprep.mubr.msk.f32.mxu0 %vm6473_vm0, %v6471_v0  ;;  %6033 = vmatprep.mubr.msk.f32.mxu1 %vm6473_vm0, %v6471_v0 }
 0x45f   : > { %6029 = vmatmul.mubr.msk.f32.vlgmr.msra.gmra.mrb[24].mxu0 %vm2202_vm1, %v3614_v10  ;;  %6034 = vmatmul.mubr.msk.f32.vlgmr.msra.gmra.mrb[40].mxu1 %vm2202_vm1, %v3615_v5 }
 0x460   : > { %6127 = vmatprep.subr.bf16.mxu0 %v6472_v1  ;;  %6068 = vmatprep.mubr.msk.f32.mxu0 %vm6473_vm0, %v6471_v0  ;;  %vm5415_vm0 = vcmask 982016  }
 0x461   : > { %6129 = vmatpush3.bf16.msra.mxu0 %v6128_v41 }
 0x462   : > { %6130 = vmatprep.subr.bf16.mxu0 %v6472_v1 }
 0x4da   : > { %v3685_v24 = vpop.f32.mrb[10].mxu0 }
 0x4db   : > { %v5960_v19 = vpop.f32.mrb[11].mxu0 }
 0x506   : > { %v3831_v2 = vpop.f32.mrb[12].mxu0 }
 0x507   : > { %v3758_v50 = vpop.f32.mrb[26].mxu1  ;;  %v4784_v22 = vcombine.low %v3685_v24, %v3831_v2  ;;  %v4785_v6 = vcombine.high %v3685_v24, %v3831_v2  ;;  %v5970_v38 = vpop.f32.mrb[13].mxu0 }
 0x508   : > { %v5965_v57 = vpop.f32.mrb[27].mxu1 }
 0x509   : > { %v4792_v11 = vrot.slane %v4784_v22, %v6812_v27  ;;  %v4799_v17 = vrot.slane %v4785_v6, %v6812_v27 }
 0x50e   : > { %v3904_v51 = vpop.f32.mrb[28].mxu1 }
 0x50f   : > { %v4800_v28 = vcombine.low %v3758_v50, %v3904_v51  ;;  %v4801_v47 = vcombine.high %v3758_v50, %v3904_v51  ;;  %v5975_v21 = vpop.f32.mrb[29].mxu1 }
 0x510   : > { %v5420_v21 = vld [vmem:[#allocation7 + $0x18] sm:$0xff] }
 0x511   : > { %v4808_v62 = vrot.slane %v4800_v28, %v6812_v27  ;;  %v4815_v0 = vrot.slane %v4801_v47, %v6812_v27  ;;  %v5419_v47 = vld [vmem:[#allocation7 + $0x10] sm:$0xff] }
 0x513   : > { %v4848_v7 = vcombine.low %v4792_v11, %v4808_v62  ;;  %v4849_v49 = vcombine.high %v4792_v11, %v4808_v62  ;;  %v4864_v54 = vcombine.low %v4799_v17, %v4815_v0  ;;  %v4865_v4 = vcombine.high %v4799_v17, %v4815_v0 }
 0x515   : > { %v4856_v13 = vrot.slane %v4848_v7, %v6817_v34  ;;  %v4863_v52 = vrot.slane %v4849_v49, %v6817_v34  ;;  %v4872_v15 = vrot.slane %v4864_v54, %v6817_v34  ;;  %v4879_v23 = vrot.slane %v4865_v4, %v6817_v34 }
 0x516   : > { %v3977_v35 = vpop.f32.mrb[14].mxu0  ;;  %v6131_v54 = vpack.c.bf16 %v5420_v21, %v5419_v47 }
 0x517   : > { %v4050_v14 = vpop.f32.mrb[30].mxu1  ;;  %v5980_v36 = vpop.f32.mrb[15].mxu0  ;;  %v5722_v18 = vcombine.low %v4856_v13, %v4863_v52  ;;  %v5724_v37 = vcombine.high %v4856_v13, %v4863_v52  ;;  %v5726_v29 = vcombine.low %v4872_v15, %v4879_v23  ;;  %v5728_v30 = vcombine.high %v4872_v15, %v4879_v23 }
 0x518   : > { %v5985_v61 = vpop.f32.mrb[31].mxu1  ;;  %6132 = vmatpush3.bf16.msra.mxu0 %v6131_v54 }
 0x519   : > { %v5064_v40 = vrot.slane %v5722_v18, %v6812_v27  ;;  %v5080_v63 = vrot.slane %v5724_v37, %v6812_v27  ;;  %v5096_v3 = vrot.slane %v5726_v29, %v6812_v27  ;;  %v5112_v46 = vrot.slane %v5728_v30, %v6812_v27  ;;  %6133 = vmatprep.subr.bf16.mxu0 %v6472_v1 }
 0x51b   : > { %v4123_v56 = vpop.f32.mrb[16].mxu0  ;;  %v4196_v32 = vpop.f32.mrb[32].mxu1  ;;  %v5121_v12 = vcombine.high %v5064_v40, %v5080_v63  ;;  %v5153_v8 = vcombine.high %v5096_v3, %v5112_v46  ;;  %v5120_v43 = vcombine.low %v5064_v40, %v5080_v63  ;;  %v5152_v55 = vcombine.low %v5096_v3, %v5112_v46 }
 0x51c   : > { %v4816_v33 = vcombine.low %v3977_v35, %v4123_v56  ;;  %v4817_v44 = vcombine.high %v3977_v35, %v4123_v56  ;;  %v4832_v53 = vcombine.low %v4050_v14, %v4196_v32  ;;  %v4833_v58 = vcombine.high %v4050_v14, %v4196_v32  ;;  %v5990_v26 = vpop.f32.mrb[17].mxu0  ;;  %v5995_v48 = vpop.f32.mrb[33].mxu1 }
 0x51d   : > { %v5135_v16 = vrot.slane %v5121_v12, %v6817_v34  ;;  %v5167_v59 = vrot.slane %v5153_v8, %v6817_v34  ;;  %v7672_v10 = vrot.slane %v5120_v43, %v6817_v34  ;;  %v7675_v5 = vrot.slane %v5152_v55, %v6817_v34 }
 0x51e   : > { %v4824_v20 = vrot.slane %v4816_v33, %v6812_v27  ;;  %v4831_v45 = vrot.slane %v4817_v44, %v6812_v27  ;;  %v4840_v9 = vrot.slane %v4832_v53, %v6812_v27  ;;  %v4847_v42 = vrot.slane %v4833_v58, %v6812_v27 }
 0x51f   : > { %v4269_v31 = vpop.f32.mrb[18].mxu0  ;;  %v5186_v38 = vcombine.low %v5135_v16, %v5167_v59  ;;  %v5185_v57 = vcombine.high %v7672_v10, %v7675_v5  ;;  %v5187_v51 = vcombine.high %v5135_v16, %v5167_v59  ;;  %v5184_v28 = vcombine.low %v7672_v10, %v7675_v5 }
 0x520   : > { %v4342_v60 = vpop.f32.mrb[34].mxu1  ;;  %v4880_v24 = vcombine.low %v4824_v20, %v4840_v9  ;;  %v4881_v19 = vcombine.high %v4824_v20, %v4840_v9  ;;  %v4896_v2 = vcombine.low %v4831_v45, %v4847_v42  ;;  %v4897_v50 = vcombine.high %v4831_v45, %v4847_v42  ;;  %v6000_v22 = vpop.f32.mrb[19].mxu0  ;;  %v5421_v9 = vld [vmem:[#allocation7 + $0x20] sm:$0xff]  ;;  %v5422_v42 = vld [vmem:[#allocation7 + $0x28] sm:$0xff] }
 0x521   : > { %v6005_v6 = vpop.f32.mrb[35].mxu1  ;;  %5333 = vrot.lane.b32.xlu0 %v5186_v38, %s6488_s10  ;;  %5329 = vrot.lane.b32.xlu1 %v5185_v57, %s6487_s9  ;;  %v5423_v38 = vld [vmem:[#allocation7 + $0x30] sm:$0xff]  ;;  %v5424_v57 = vld [vmem:[#allocation7 + $0x38] sm:$0xff]  ;;  %v6134_v21 = vpack.c.bf16 %v5422_v42, %v5421_v9 }
 0x522   : > { %v4888_v11 = vrot.slane %v4880_v24, %v6817_v34  ;;  %v4895_v17 = vrot.slane %v4881_v19, %v6817_v34  ;;  %v4904_v62 = vrot.slane %v4896_v2, %v6817_v34  ;;  %v4911_v0 = vrot.slane %v4897_v50, %v6817_v34 }
 0x523   : > { %6135 = vmatpush3.bf16.msra.mxu0 %v6134_v21 }
 0x524   : > { %v4415_v7 = vpop.f32.mrb[20].mxu0  ;;  %v4488_v49 = vpop.f32.mrb[36].mxu1  ;;  %v5723_v4 = vcombine.low %v4888_v11, %v4895_v17  ;;  %v5725_v13 = vcombine.high %v4888_v11, %v4895_v17  ;;  %v5727_v52 = vcombine.low %v4904_v62, %v4911_v0  ;;  %v5729_v15 = vcombine.high %v4904_v62, %v4911_v0  ;;  %6136 = vmatprep.subr.bf16.mxu0 %v6472_v1 }
 0x525   : > { %v6010_v23 = vpop.f32.mrb[21].mxu0  ;;  %v6015_v35 = vpop.f32.mrb[37].mxu1  ;;  %v4920_v14 = vcombine.low %v4269_v31, %v4415_v7  ;;  %v4921_v36 = vcombine.high %v4269_v31, %v4415_v7  ;;  %v4936_v18 = vcombine.low %v4342_v60, %v4488_v49  ;;  %v4937_v37 = vcombine.high %v4342_v60, %v4488_v49  ;;  %5337 = vrot.lane.b32.xlu1 %v5187_v51, %s6485_s27 }
 0x526   : > { %v5071_v29 = vrot.slane %v5723_v4, %v6812_v27  ;;  %v5087_v30 = vrot.slane %v5725_v13, %v6812_v27  ;;  %v5103_v61 = vrot.slane %v5727_v52, %v6812_v27  ;;  %v5119_v40 = vrot.slane %v5729_v15, %v6812_v27 }
 0x527   : > { %v4928_v63 = vrot.slane %v4920_v14, %v6812_v27  ;;  %v4935_v3 = vrot.slane %v4921_v36, %v6812_v27  ;;  %v4944_v46 = vrot.slane %v4936_v18, %v6812_v27  ;;  %v4951_v25 = vrot.slane %v4937_v37, %v6812_v27 }
 0x528   : > { %v5136_v39 = vcombine.low %v5071_v29, %v5087_v30  ;;  %v5168_v56 = vcombine.low %v5103_v61, %v5119_v40  ;;  %v5137_v32 = vcombine.high %v5071_v29, %v5087_v30  ;;  %v5169_v41 = vcombine.high %v5103_v61, %v5119_v40 }
 0x529   : > { %v4984_v33 = vcombine.low %v4928_v63, %v4944_v46  ;;  %v4985_v44 = vcombine.high %v4928_v63, %v4944_v46  ;;  %v5000_v53 = vcombine.low %v4935_v3, %v4951_v25  ;;  %v5001_v58 = vcombine.high %v4935_v3, %v4951_v25 }
 0x52a   : > { %v5144_v26 = vrot.slane %v5136_v39, %v6817_v34  ;;  %v5176_v48 = vrot.slane %v5168_v56, %v6817_v34  ;;  %v5151_v12 = vrot.slane %v5137_v32, %v6817_v34  ;;  %v5183_v8 = vrot.slane %v5169_v41, %v6817_v34  ;;  %v5425_v39 = vld [vmem:[#allocation7 + $0x40] sm:$0xff]  ;;  %v5426_v56 = vld [vmem:[#allocation7 + $0x48] sm:$0xff] }
 0x52b   : > { %v4992_v43 = vrot.slane %v4984_v33, %v6817_v34  ;;  %v4999_v55 = vrot.slane %v4985_v44, %v6817_v34  ;;  %v5008_v20 = vrot.slane %v5000_v53, %v6817_v34  ;;  %v5015_v45 = vrot.slane %v5001_v58, %v6817_v34 }
 0x52c   : > { %v5189_v31 = vcombine.high %v5144_v26, %v5176_v48  ;;  %v5188_v60 = vcombine.low %v5144_v26, %v5176_v48  ;;  %v5191_v16 = vcombine.high %v5151_v12, %v5183_v8  ;;  %v5190_v59 = vcombine.low %v5151_v12, %v5183_v8  ;;  %v5427_v12 = vld [vmem:[#allocation7 + $0x50] sm:$0xff]  ;;  %v5428_v8 = vld [vmem:[#allocation7 + $0x58] sm:$0xff] }
 0x52d   : > { %v5730_v24 = vcombine.low %v4992_v43, %v4999_v55  ;;  %v5732_v19 = vcombine.high %v4992_v43, %v4999_v55  ;;  %v5734_v2 = vcombine.low %v5008_v20, %v5015_v45  ;;  %v5736_v50 = vcombine.high %v5008_v20, %v5015_v45 }
 0x52e   : > { %v4561_v22 = vpop.f32.mrb[22].mxu0  ;;  %v4634_v6 = vpop.f32.mrb[38].mxu1  ;;  %5345 = vrot.lane.b32.xlu1 %v5189_v31, %s6483_s26  ;;  %5341 = vrot.lane.b32.xlu0 %v5188_v60, %s6486_s29  ;;  %v6137_v7 = vpack.c.bf16 %v5424_v57, %v5423_v38  ;;  %v6140_v43 = vpack.c.bf16 %v5426_v56, %v5425_v39  ;;  %v6143_v42 = vpack.c.bf16 %v5428_v8, %v5427_v12  ;;  %v5738_v12 = vld [vmem:[%s7806_s3] ss:$0 sm:$0xff] }
 0x52f   : > { %v6020_v51 = vpop.f32.mrb[23].mxu0  ;;  %v6025_v47 = vpop.f32.mrb[39].mxu1  ;;  %v5200_v11 = vrot.slane %v5730_v24, %v6812_v27  ;;  %v5216_v17 = vrot.slane %v5732_v19, %v6812_v27  ;;  %v5232_v62 = vrot.slane %v5734_v2, %v6812_v27  ;;  %v5248_v0 = vrot.slane %v5736_v50, %v6812_v27  ;;  %v5429_v24 = vld [vmem:[#allocation7 + $0x60] sm:$0xff]  ;;  %v5430_v19 = vld [vmem:[#allocation7 + $0x68] sm:$0xff] }
 0x530   : > { %6138 = vmatpush3.bf16.msra.mxu0 %v6137_v7  ;;  %v6146_v38 = vpack.c.bf16 %v5430_v19, %v5429_v24 }
 0x531   : > { %v5256_v4 = vcombine.low %v5200_v11, %v5216_v17  ;;  %v5288_v13 = vcombine.low %v5232_v62, %v5248_v0  ;;  %v5257_v52 = vcombine.high %v5200_v11, %v5216_v17  ;;  %v5289_v15 = vcombine.high %v5232_v62, %v5248_v0  ;;  %6139 = vmatprep.subr.bf16.mxu0 %v6472_v1  ;;  %v5431_v11 = vld [vmem:[#allocation7 + $0x70] sm:$0xff]  ;;  %v5432_v17 = vld [vmem:[#allocation7 + $0x78] sm:$0xff] }
 0x532   : > { %v4707_v49 = vpop.f32.mrb[24].mxu0  ;;  %v4780_v54 = vpop.f32.mrb[40].mxu1  ;;  %5353 = vrot.lane.b32.xlu1 %v5191_v16, %s6481_s13  ;;  %5349 = vrot.lane.b32.xlu0 %v5190_v59, %s6484_s28 }
 0x533   : > { %v4952_v23 = vcombine.low %v4561_v22, %v4707_v49  ;;  %v4953_v35 = vcombine.high %v4561_v22, %v4707_v49  ;;  %v4968_v14 = vcombine.low %v4634_v6, %v4780_v54  ;;  %v4969_v36 = vcombine.high %v4634_v6, %v4780_v54  ;;  %v6030_v18 = vpop.f32.mrb[25].mxu0  ;;  %v6035_v37 = vpop.f32.mrb[41].mxu1 }
 0x534   : > { %v5264_v29 = vrot.slane %v5256_v4, %v6817_v34  ;;  %v5296_v30 = vrot.slane %v5288_v13, %v6817_v34  ;;  %v5271_v61 = vrot.slane %v5257_v52, %v6817_v34  ;;  %v5303_v40 = vrot.slane %v5289_v15, %v6817_v34  ;;  %6141 = vmatpush3.bf16.msra.mxu0 %v6140_v43 }
 0x535   : > { %v4960_v63 = vrot.slane %v4952_v23, %v6812_v27  ;;  %v4967_v3 = vrot.slane %v4953_v35, %v6812_v27  ;;  %v4976_v46 = vrot.slane %v4968_v14, %v6812_v27  ;;  %v4983_v25 = vrot.slane %v4969_v36, %v6812_v27  ;;  %6142 = vmatprep.subr.bf16.mxu0 %v6472_v1 }
 0x536   : > { %v5321_v32 = vcombine.high %v5264_v29, %v5296_v30  ;;  %v5320_v41 = vcombine.low %v5264_v29, %v5296_v30  ;;  %v5323_v33 = vcombine.high %v5271_v61, %v5303_v40  ;;  %v5322_v44 = vcombine.low %v5271_v61, %v5303_v40 }
 0x537   : > { %v5016_v53 = vcombine.low %v4960_v63, %v4976_v46  ;;  %v5017_v58 = vcombine.high %v4960_v63, %v4976_v46  ;;  %v5032_v26 = vcombine.low %v4967_v3, %v4983_v25  ;;  %v5033_v48 = vcombine.high %v4967_v3, %v4983_v25 }
 0x538   : > { %5361 = vrot.lane.b32.xlu1 %v5321_v32, %s6479_s7  ;;  %5357 = vrot.lane.b32.xlu0 %v5320_v41, %s6482_s24  ;;  %s5512_s24 = scalar_lea.sflag [#allocation4], %s6686_s5 }
 0x539   : > { %v5024_v55 = vrot.slane %v5016_v53, %v6817_v34  ;;  %v5031_v20 = vrot.slane %v5017_v58, %v6817_v34  ;;  %v5040_v45 = vrot.slane %v5032_v26, %v6817_v34  ;;  %v5047_v9 = vrot.slane %v5033_v48, %v6817_v34  ;;  %6144 = vmatpush3.bf16.msra.mxu0 %v6143_v42 }
 0x53a   : > { %6145 = vmatprep.subr.bf16.mxu0 %v6472_v1 }
 0x53b   : > { %v5731_v31 = vcombine.low %v5024_v55, %v5031_v20  ;;  %v5733_v60 = vcombine.high %v5024_v55, %v5031_v20  ;;  %v5735_v16 = vcombine.low %v5040_v45, %v5047_v9  ;;  %v5737_v59 = vcombine.high %v5040_v45, %v5047_v9 }
 0x53c   : > { %5369 = vrot.lane.b32.xlu1 %v5323_v33, %s6478_s25  ;;  %5365 = vrot.lane.b32.xlu0 %v5322_v44, %s6480_s12 }
 0x53d   : > { %v5207_v2 = vrot.slane %v5731_v31, %v6812_v27  ;;  %v5223_v50 = vrot.slane %v5733_v60, %v6812_v27  ;;  %v5239_v22 = vrot.slane %v5735_v16, %v6812_v27  ;;  %v5255_v6 = vrot.slane %v5737_v59, %v6812_v27  ;;  %6147 = vmatpush3.bf16.msra.mxu0 %v6146_v38 }
 0x53e   : > { %v6149_v27 = vpack.c.bf16 %v5432_v17, %v5431_v11  ;;  %6148 = vmatprep.subr.bf16.mxu0 %v6472_v1 }
 0x53f   : > { %v5272_v57 = vcombine.low %v5207_v2, %v5223_v50  ;;  %v5304_v51 = vcombine.low %v5239_v22, %v5255_v6  ;;  %v5273_v47 = vcombine.high %v5207_v2, %v5223_v50  ;;  %v5305_v21 = vcombine.high %v5239_v22, %v5255_v6 }
 0x541   : > { %v5280_v62 = vrot.slane %v5272_v57, %v6817_v34  ;;  %v5312_v0 = vrot.slane %v5304_v51, %v6817_v34  ;;  %v5287_v7 = vrot.slane %v5273_v47, %v6817_v34  ;;  %v5319_v49 = vrot.slane %v5305_v21, %v6817_v34  ;;  %6150 = vmatpush3.bf16.msra.mxu0 %v6149_v27 }
 0x543   : > { %v5325_v54 = vcombine.high %v5280_v62, %v5312_v0  ;;  %v5324_v4 = vcombine.low %v5280_v62, %v5312_v0  ;;  %v5327_v13 = vcombine.high %v5287_v7, %v5319_v49  ;;  %v5326_v52 = vcombine.low %v5287_v7, %v5319_v49 }
 0x545   : > { %5377 = vrot.lane.b32.xlu1 %v5325_v54, %s6477_s6  ;;  %5373 = vrot.lane.b32.xlu0 %v5324_v4, %s6476_s30  ;;  %s5740_s30 = sshll.u32 %s6538_s19, 7  ;;  %s241_s6 = scalar_lea.vmem [#allocation8], %s5622_s8 }
 0x546   : > { %s5525_s25 = sshll.u32 %s241_s6, 4  ;;  %s7759_s13 = scalar_lea.hbm %s7807_s4, %s5740_s30  ;;  %s7761_s25 = int_to_ptr.vmem [resolvable:$true] %s5525_s25 }
 0x547   : > { %s6392_s26 = scalar_lea.vmem %s7761_s25, 128  ;;  %s6491_s19 = smov [#allocation8]  }
 0x548   : > { %p6393_p11 = scmp.ne.s32.totalorder %s7761_s25, %s6392_s26  ;;  %s6396_s8 = sshll.u32 %s6491_s19, 4  ;;  %s6397_s8 = int_to_ptr.vmem [resolvable:$false] %s6396_s8 }
 0x549   : > { %5385 = vrot.lane.b32.xlu1 %v5327_v13, %s6475_s23  ;;  %5381 = vrot.lane.b32.xlu0 %v5326_v52, %s6474_s21  ;;  %s6398_s28 = scalar_lea.vmem %s6397_s8, 256  ;;  %p6399_p5 = scmp.lt.s32.totalorder %s7761_s25, %s6397_s8 }
 0x54a   : > { %p6394_p1 = pnand %p6393_p11, %p7823_p0  ;;  %p6400_p9 = scmp.lt.s32.totalorder %s6398_s28, %s6392_s26 }
 0x54c   : > { %p6395_p3 = pneg %p6394_p1  ;;  %p6401_p12 = por %p6400_p9, %p6399_p5 }
 0x54e   : > { %p6402_p2 = pnand %p6401_p12, %p6395_p3 }
 0x593   : > { %v5330_v15 = vpop.permute.xlu1 %5329  ;;  %v5334_v23 = vpop.permute.xlu0 %5333 }
 0x594   : > { %v5388_v36 = vsel %vm2202_vm1, %v5184_v28, %v5330_v15 }
 0x595   : > { %v5390_v1 = vsel %vm5389_vm3, %v5388_v36, %v5334_v23 }
 0x597   : > { %v5338_v34 = vpop.permute.xlu1 %5337 }
 0x598   : > { %v5392_v37 = vsel %vm5391_vm4, %v5390_v1, %v5338_v34 }
 0x5a0   : > { %v5346_v35 = vpop.permute.xlu1 %5345  ;;  %v5342_v14 = vpop.permute.xlu0 %5341 }
 0x5a1   : > { %v5394_v30 = vsel %vm5393_vm5, %v5392_v37, %v5342_v14 }
 0x5a2   : > { %v5396_v61 = vsel %vm5395_vm6, %v5394_v30, %v5346_v35 }
 0x5a4   : > { %v5350_v18 = vpop.permute.xlu0 %5349  ;;  %v5354_v29 = vpop.permute.xlu1 %5353 }
 0x5a5   : > { %v5398_v63 = vsel %vm5397_vm7, %v5396_v61, %v5350_v18 }
 0x5a6   : > { %v5400_v46 = vsel %vm5399_vm8, %v5398_v63, %v5354_v29 }
 0x5aa   : > { %v5358_v40 = vpop.permute.xlu0 %5357  ;;  %v5362_v3 = vpop.permute.xlu1 %5361 }
 0x5ab   : > { %v5402_v10 = vsel %vm5401_vm9, %v5400_v46, %v5358_v40 }
 0x5ac   : > { %v5404_v25 = vsel %vm5403_vm10, %v5402_v10, %v5362_v3 }
 0x5ae   : > { %v5366_v5 = vpop.permute.xlu0 %5365  ;;  %v5370_v28 = vpop.permute.xlu1 %5369 }
 0x5af   : > { %v5406_v39 = vsel %vm5405_vm11, %v5404_v25, %v5366_v5 }
 0x5b0   : > { %v5408_v32 = vsel %vm5407_vm12, %v5406_v39, %v5370_v28 }
 0x5b7   : > { %v5378_v56 = vpop.permute.xlu1 %5377  ;;  %v5374_v41 = vpop.permute.xlu0 %5373 }
 0x5b8   : > { %v5410_v33 = vsel %vm5409_vm13, %v5408_v32, %v5374_v41 }
 0x5b9   : > { %v5412_v53 = vsel %vm5411_vm14, %v5410_v33, %v5378_v56 }
 0x5bb   : > { %v5386_v44 = vpop.permute.xlu1 %5385  ;;  %v5382_v58 = vpop.permute.xlu0 %5381 }
 0x5bc   : > { %v5414_v26 = vsel %vm5413_vm15, %v5412_v53, %v5382_v58 }
 0x5bd   : > { %v5416_v48 = vsel %vm5415_vm0, %v5414_v26, %v5386_v44 }
 0x5be   : > { %6069 = vmatmul.mubr.f32.vlgmr.msra.gmra.mrb[26].mxu0 %v5416_v48 }
 0x691   : > { %v5506_v8 = vpop.f32.mrb[26].mxu0 }
 0x692   : > { %v5507_v43 = vadd.f32 %v5738_v12, %v5506_v8  ;;  %v6070_v55 = vpop.f32.mrb[27].mxu0 }
 0x694   : > { %5510 = vst [vmem:[%s241_s6] sm:$0xff] %v5507_v43 }
 0x695   : > { %6405 = shalt.err (!%p6402_p2)
}
 0x696   : > { %s6406_s5 = scalar_lea.hbm %s7759_s13, 128  ;;  %s6410_s9 = scalar_lea.hbm %s7807_s4, 256 }
 0x697   : > { %p6407_p13 = scmp.ne.s32.totalorder %s7759_s13, %s6406_s5  ;;  %p6411_p4 = scmp.lt.u32.totalorder %s7759_s13, %s7807_s4 }
 0x698   : > { %p6412_p7 = scmp.lt.u32.totalorder %s6410_s9, %s6406_s5  ;;  %p6414_p11 = scmp.lt.u32.totalorder %s6406_s5, %s7759_s13 }
 0x699   : > { %p6408_p6 = pnand %p6407_p13, %p7823_p0 }
 0x69a   : > { %p6413_p8 = por %p6412_p7, %p6411_p4 }
 0x69b   : > { %p6409_p10 = pneg %p6408_p6 }
 0x69c   : > { %p6415_p1 = por %p6414_p11, %p6413_p8 }
 0x69e   : > { %p6416_p3 = pnand %p6415_p1, %p6409_p10 }
 0x6a0   : > { %6419 = shalt.err (!%p6416_p3)
}
 0x6a1   : > { %6161 = dma.vmem_to_hbm [thread:$0]  (%p7823_p0), %s7761_s25, 128, %s7759_s13, %s5512_s24  }
 0x6a2 PF: > { %s5537_s23 = sand.u32 1, %s6450_s15   ;;  %p7824_p5 = scmp.ne.s32.totalorder %s7812_s22, 0 }
 0x6a3   : > { %p7825_p9 = scmp.ge.s32.totalorder %s6462_s18, 2  ;;  %s5538_s30 = scalar_lea.sflag [#allocation4], %s5537_s23 }
 0x6a5   : > { %p6175_p12 = pnand %p7825_p9, %p7824_p5 }
 0x6a7   : > { %6445 = dma.done.wait (!%p6175_p12), %s5538_s30, 128  }
 0x6a8   : > { %6447 = vsyncadd (!%p6175_p12), %s5538_s30, 4294967168  ;;  %p18_p2 = scmp.ge.s32.totalorder %s6627_s11, 4   ;;  %s7826_s15 = smov %s6454_s16 }
 0x6a9   : > { %s7827_s16 = smov %s6458_s17  ;;  %s7828_s17 = smov %s6636_s14 }
 0x6aa   : > { %s7829_s18 = smov %s6627_s11  ;;  %20 = sbr.rel (!%p18_p2) target bundleno = 6 (0x6), region = 89 }
 0x6b1   :  { %5543 = vsyncpa [#allocation3], 1 }
 0x6b2   :  { %5545 = vsyncpa [#allocation3 + $0x1], 1 }
 0x6b3   :  { %5546 = vsyncpa [#allocation6], 1 }
 0x6b4   :  { %5547 = vsyncpa [#allocation4], 1 }
 0x6b5   :  { %5549 = vsyncpa [#allocation4 + $0x1], 1 }

</bundles_post_ra>
